<compile_context>
chip_gen: v7x
topology: tpu7x:2x2x1
jax: 0.10.0
libtpu: 0.0.40
codegen_flags: <defaults>
</compile_context>

<pallas_src>
import functools
import numpy as np
import jax
import jax.numpy as jnp
from jax.experimental import pallas as pl
from jax.experimental.pallas import tpu as pltpu

BN_EPS = 1e-5


# --------------------------------------------------------------------------
# Generation-aware VMEM budgets
# --------------------------------------------------------------------------
def _tpu_mem_limits():
    vmem = None
    try:
        info = pltpu.get_tpu_info()
        for name in ("vmem_capacity_bytes", "vmem_size_bytes", "vmem_bytes"):
            v = getattr(info, name, None)
            if isinstance(v, (int, np.integer)) and v > 0:
                vmem = int(v)
                break
    except Exception:
        vmem = None
    if vmem is not None and vmem >= 96 * 2**20:
        # v5e / v6e: 128 MiB physical VMEM -> bigger tiles, fewer K passes.
        limit = min(100 * 2**20, vmem - 16 * 2**20)
        return {"vmem_limit": limit, "mm_budget": 48 * 2**20,
                "ew_budget": 32 * 2**20, "halo_budget": 56 * 2**20}
    # v7x (64 MiB) or unknown: conservative.
    return {"vmem_limit": 48 * 2**20, "mm_budget": 24 * 2**20,
            "ew_budget": 16 * 2**20, "halo_budget": 28 * 2**20}


LIM = _tpu_mem_limits()


# --------------------------------------------------------------------------
# Pallas kernels
# --------------------------------------------------------------------------
def _mm_kernel(x_ref, w_ref, b_ref, o_ref, acc_ref, *, nk, act):
    """bf16 matmul into f32 VMEM accumulator + bias + optional act, bf16/f32 out."""
    k = pl.program_id(1)

    @pl.when(k == 0)
    def _():
        acc_ref[...] = jnp.zeros_like(acc_ref)

    acc_ref[...] += jnp.dot(x_ref[...], w_ref[...],
                            preferred_element_type=jnp.float32)

    @pl.when(k == nk - 1)
    def _():
        z = acc_ref[...] + b_ref[...]
        if act == "relu":
            z = jnp.maximum(z, 0.0)
        o_ref[...] = z.astype(o_ref.dtype)


def _mm_stats_kernel(x_ref, w_ref, b_ref, o_ref, stats_ref, acc_ref, *, nk):
    """Same matmul, also emits per-tile channel sum / sumsq (for BatchNorm)."""
    k = pl.program_id(1)

    @pl.when(k == 0)
    def _():
        acc_ref[...] = jnp.zeros_like(acc_ref)

    acc_ref[...] += jnp.dot(x_ref[...], w_ref[...],
                            preferred_element_type=jnp.float32)

    @pl.when(k == nk - 1)
    def _():
        z = acc_ref[...] + b_ref[...]
        o_ref[...] = z.astype(o_ref.dtype)
        s = jnp.sum(z, axis=0, keepdims=True)
        sq = jnp.sum(z * z, axis=0, keepdims=True)
        row = jax.lax.broadcasted_iota(jnp.int32, (8, z.shape[1]), 0)
        stats_ref[...] = jnp.where(row == 0, s, jnp.where(row == 1, sq, 0.0))[None]


def _mm2_kernel(xa_ref, xb_ref, wa_ref, wb_ref, b_ref, o_ref):
    """Concat-free 1x1 conv on two source maps: o = xa@wa + xb@wb + b."""
    z = jnp.dot(xa_ref[...], wa_ref[...], preferred_element_type=jnp.float32)
    z = z + jnp.dot(xb_ref[...], wb_ref[...], preferred_element_type=jnp.float32)
    o_ref[...] = (z + b_ref[...]).astype(o_ref.dtype)


def _conv3x3_stats_kernel(x_ref, w_ref, b_ref, o_ref, stats_ref, acc_ref, *, th, W):
    """Halo 3x3 conv: 9 shifted dots over a VMEM-resident padded image.

    x_ref : (1, H+2, W+2, Cin) bf16 (whole padded image, resident per batch)
    w_ref : (9, Cin, Cout) bf16, b_ref: (1, Cout) f32
    o_ref : (th*W, Cout) bf16 block of the flattened (N*H*W, Cout) output
    """
    h = pl.program_id(1)
    cin = x_ref.shape[3]
    first = True
    for dy in range(3):
        for dx in range(3):
            patch = x_ref[0, pl.ds(h * th + dy, th), pl.ds(dx, W), :]
            prod = jnp.dot(patch.reshape(th * W, cin), w_ref[dy * 3 + dx],
                           preferred_element_type=jnp.float32)
            if first:
                acc_ref[...] = prod
                first = False
            else:
                acc_ref[...] += prod
    z = acc_ref[...] + b_ref[...]
    o_ref[...] = z.astype(o_ref.dtype)
    s = jnp.sum(z, axis=0, keepdims=True)
    sq = jnp.sum(z * z, axis=0, keepdims=True)
    row = jax.lax.broadcasted_iota(jnp.int32, (8, z.shape[1]), 0)
    stats_ref[...] = jnp.where(row == 0, s, jnp.where(row == 1, sq, 0.0))[None]


def _bn_act_kernel(z_ref, s_ref, t_ref, o_ref, *, act):
    y = z_ref[...].astype(jnp.float32) * s_ref[...] + t_ref[...]
    if act == "relu":
        y = jnp.maximum(y, 0.0)
    o_ref[...] = y.astype(o_ref.dtype)


def _bn_act_res_kernel(z_ref, r_ref, s_ref, t_ref, o_ref, *, act):
    """BN apply + act with a fused residual add: o = r + act(BN(z))."""
    y = z_ref[...].astype(jnp.float32) * s_ref[...] + t_ref[...]
    if act == "relu":
        y = jnp.maximum(y, 0.0)
    y = y + r_ref[...].astype(jnp.float32)
    o_ref[...] = y.astype(o_ref.dtype)


def _att_head_kernel(zx_ref, zg_ref, sx_ref, tx_ref, sg_ref, tg_ref,
                     wp_ref, bp_ref, psi_ref, st_ref):
    """Fused attention head: pre = relu(BN(Wx x) + BN(Wg g)) stays in vregs;
    psi logits = pre @ w_psi + b_psi via VPU multiply + lane reduce."""
    pre = jnp.maximum(
        zx_ref[...].astype(jnp.float32) * sx_ref[...] + tx_ref[...]
        + zg_ref[...].astype(jnp.float32) * sg_ref[...] + tg_ref[...], 0.0)
    psi = jnp.sum(pre * wp_ref[...], axis=-1, keepdims=True) + bp_ref[...]
    psi_ref[...] = psi
    s = jnp.sum(psi)
    sq = jnp.sum(psi * psi)
    row = jax.lax.broadcasted_iota(jnp.int32, (8, 1), 0)
    st_ref[...] = jnp.where(row == 0, s, jnp.where(row == 1, sq, 0.0))[None]


def _gate_kernel(x_ref, zp_ref, s_ref, t_ref, o_ref):
    """Fused attention gate: o = x * sigmoid(BN(psi)); lane-dense output."""
    psi = jax.nn.sigmoid(zp_ref[...] * s_ref[...] + t_ref[...])
    o_ref[...] = (x_ref[...].astype(jnp.float32) * psi).astype(o_ref.dtype)


# --------------------------------------------------------------------------
# Tile-size heuristics (VMEM-aware)
# --------------------------------------------------------------------------
def _pick_tm(M, cap):
    cap = max(8, int(cap))
    if M <= cap:
        return M
    cap -= cap % 8
    for tm in range(cap, 7, -8):
        if M % tm == 0:
            return tm
    return M


def _pick_tk(K, Cout, tm, budget):
    def cost(tk):
        return (2 * (tm * tk + tk * Cout) * 2 + tm * Cout * 4
                + 2 * tm * Cout * 2 + 8 * Cout * 4)
    j = K // 128
    for d in range(j, 0, -1):
        if j % d == 0 and cost(128 * d) <= budget:
            return 128 * d
    return 128


def _pick_rows(M, C, nbuf):
    per_row = max(1, (nbuf + 1) * 2 * C * 2)
    cap = LIM["ew_budget"] // per_row
    return _pick_tm(M, min(4096, max(8, cap)))


def _halo_tile(N, H, W, Cin, Cout):
    """Row tile for the halo conv, or None -> fall back to im2col matmul."""
    if W % 16 != 0:
        return None
    budget = LIM["halo_budget"]
    fixed = (2 * (H + 2) * (W + 2) * Cin * 2      # resident padded image (x2 buf)
             + 2 * 9 * Cin * Cout * 2             # weights (x2 buf)
             + 2 * 8 * Cout * 4 + 2 * Cout * 4)   # stats + bias blocks
    for th in range(H, 0, -1):
        if H % th:
            continue
        if th * W * Cout * 4 > 1024 * 1024:       # cap the f32 tap-product size
            continue
        if fixed + 2 * th * W * Cout * 4 + 2 * th * W * Cout * 2 <= budget:
            return th
    return None


# --------------------------------------------------------------------------
# pallas_call builders (cached so identical shapes reuse one callable)
# --------------------------------------------------------------------------
@functools.lru_cache(maxsize=None)
def _build_mm(M, K, Cout, tm, tk, act, emit_stats, out_dtype_name):
    nm, nk = M // tm, K // tk
    out_dtype = jnp.dtype(out_dtype_name)
    if emit_stats:
        kern = functools.partial(_mm_stats_kernel, nk=nk)
        out_shape = (jax.ShapeDtypeStruct((M, Cout), out_dtype),
                     jax.ShapeDtypeStruct((nm, 8, Cout), jnp.float32))
        out_specs = (pl.BlockSpec((tm, Cout), lambda m, k: (m, 0)),
                     pl.BlockSpec((1, 8, Cout), lambda m, k: (m, 0, 0)))
    else:
        kern = functools.partial(_mm_kernel, nk=nk, act=act)
        out_shape = jax.ShapeDtypeStruct((M, Cout), out_dtype)
        out_specs = pl.BlockSpec((tm, Cout), lambda m, k: (m, 0))
    return pl.pallas_call(
        kern,
        out_shape=out_shape,
        grid=(nm, nk),
        in_specs=[pl.BlockSpec((tm, tk), lambda m, k: (m, k)),
                  pl.BlockSpec((tk, Cout), lambda m, k: (k, 0)),
                  pl.BlockSpec((1, Cout), lambda m, k: (0, 0))],
        out_specs=out_specs,
        scratch_shapes=[pltpu.VMEM((tm, Cout), jnp.float32)],
        compiler_params=pltpu.CompilerParams(
            dimension_semantics=("parallel", "arbitrary"),
            vmem_limit_bytes=LIM["vmem_limit"]),
    )


@functools.lru_cache(maxsize=None)
def _build_mm2(M, Ka, Kb, Cout, tm, out_dtype_name):
    return pl.pallas_call(
        _mm2_kernel,
        out_shape=jax.ShapeDtypeStruct((M, Cout), jnp.dtype(out_dtype_name)),
        grid=(M // tm,),
        in_specs=[pl.BlockSpec((tm, Ka), lambda m: (m, 0)),
                  pl.BlockSpec((tm, Kb), lambda m: (m, 0)),
                  pl.BlockSpec((Ka, Cout), lambda m: (0, 0)),
                  pl.BlockSpec((Kb, Cout), lambda m: (0, 0)),
                  pl.BlockSpec((1, Cout), lambda m: (0, 0))],
        out_specs=pl.BlockSpec((tm, Cout), lambda m: (m, 0)),
        compiler_params=pltpu.CompilerParams(
            dimension_semantics=("parallel",),
            vmem_limit_bytes=LIM["vmem_limit"]),
    )


@functools.lru_cache(maxsize=None)
def _build_conv3x3(N, H, W, Cin, Cout, th):
    nH = H // th
    M = N * H * W
    kern = functools.partial(_conv3x3_stats_kernel, th=th, W=W)
    return pl.pallas_call(
        kern,
        out_shape=(jax.ShapeDtypeStruct((M, Cout), jnp.bfloat16),
                   jax.ShapeDtypeStruct((N * nH, 8, Cout), jnp.float32)),
        grid=(N, nH),
        in_specs=[pl.BlockSpec((1, H + 2, W + 2, Cin), lambda n, h: (n, 0, 0, 0)),
                  pl.BlockSpec((9, Cin, Cout), lambda n, h: (0, 0, 0)),
                  pl.BlockSpec((1, Cout), lambda n, h: (0, 0))],
        out_specs=(pl.BlockSpec((th * W, Cout), lambda n, h: (n * nH + h, 0)),
                   pl.BlockSpec((1, 8, Cout), lambda n, h: (n * nH + h, 0, 0))),
        scratch_shapes=[pltpu.VMEM((th * W, Cout), jnp.float32)],
        compiler_params=pltpu.CompilerParams(
            dimension_semantics=("parallel", "arbitrary"),
            vmem_limit_bytes=LIM["vmem_limit"]),
    )


@functools.lru_cache(maxsize=None)
def _build_bn_apply(M, C, tm, act, has_res, out_dtype_name):
    big = pl.BlockSpec((tm, C), lambda m: (m, 0))
    vec = pl.BlockSpec((1, C), lambda m: (0, 0))
    if has_res:
        kern = functools.partial(_bn_act_res_kernel, act=act)
        in_specs = [big, big, vec, vec]
    else:
        kern = functools.partial(_bn_act_kernel, act=act)
        in_specs = [big, vec, vec]
    return pl.pallas_call(
        kern,
        out_shape=jax.ShapeDtypeStruct((M, C), jnp.dtype(out_dtype_name)),
        grid=(M // tm,),
        in_specs=in_specs,
        out_specs=pl.BlockSpec((tm, C), lambda m: (m, 0)),
        compiler_params=pltpu.CompilerParams(
            dimension_semantics=("parallel",),
            vmem_limit_bytes=LIM["vmem_limit"]),
    )


@functools.lru_cache(maxsize=None)
def _build_att_head(M, Fint, tm):
    big = pl.BlockSpec((tm, Fint), lambda m: (m, 0))
    vec = pl.BlockSpec((1, Fint), lambda m: (0, 0))
    one = pl.BlockSpec((1, 1), lambda m: (0, 0))
    return pl.pallas_call(
        _att_head_kernel,
        out_shape=(jax.ShapeDtypeStruct((M, 1), jnp.float32),
                   jax.ShapeDtypeStruct((M // tm, 8, 1), jnp.float32)),
        grid=(M // tm,),
        in_specs=[big, big, vec, vec, vec, vec, vec, one],
        out_specs=(pl.BlockSpec((tm, 1), lambda m: (m, 0)),
                   pl.BlockSpec((1, 8, 1), lambda m: (m, 0, 0))),
        compiler_params=pltpu.CompilerParams(
            dimension_semantics=("parallel",),
            vmem_limit_bytes=LIM["vmem_limit"]),
    )


@functools.lru_cache(maxsize=None)
def _build_gate(M, Cx, tm):
    return pl.pallas_call(
        _gate_kernel,
        out_shape=jax.ShapeDtypeStruct((M, Cx), jnp.bfloat16),
        grid=(M // tm,),
        in_specs=[pl.BlockSpec((tm, Cx), lambda m: (m, 0)),
                  pl.BlockSpec((tm, 1), lambda m: (m, 0)),
                  pl.BlockSpec((1, 1), lambda m: (0, 0)),
                  pl.BlockSpec((1, 1), lambda m: (0, 0))],
        out_specs=pl.BlockSpec((tm, Cx), lambda m: (m, 0)),
        compiler_params=pltpu.CompilerParams(
            dimension_semantics=("parallel",),
            vmem_limit_bytes=LIM["vmem_limit"]),
    )


# --------------------------------------------------------------------------
# Conv / BN helpers (NHWC, bf16 feature maps)
# --------------------------------------------------------------------------
def _matmul(x2, wmat, bias, act=None, emit_stats=False, out_dtype=jnp.bfloat16):
    M, K = x2.shape
    Cout = wmat.shape[1]
    budget = LIM["mm_budget"]
    tm = _pick_tm(M, 1024)
    if K % 128 == 0:
        tk = _pick_tk(K, Cout, tm, budget)
    else:
        # K tile must be a multiple of 128 or the full K -> full K; shrink tm
        # instead so the tiles stay inside the VMEM budget.
        tk = K
        wbytes = 2 * K * Cout * 2
        per_row = 2 * K * 2 + Cout * 4 + 2 * Cout * 2
        tm = _pick_tm(M, min(1024, max(8, (budget - wbytes) // per_row)))
    call = _build_mm(M, K, Cout, tm, tk, act, emit_stats, jnp.dtype(out_dtype).name)
    return call(x2.astype(jnp.bfloat16), wmat, bias)


def _bn_affine(stats, m_rows, bn):
    """Reduce per-tile stats and build per-channel BN scale / shift (f32)."""
    ssum = jnp.sum(stats[:, 0, :], axis=0)
    ssq = jnp.sum(stats[:, 1, :], axis=0)
    mean = ssum / m_rows
    # Biased variance (PyTorch training-mode batch stats); E[x^2]-E[x]^2 in f32.
    var = jnp.maximum(ssq / m_rows - mean * mean, 0.0)
    scale = bn["gamma"] * jax.lax.rsqrt(var + BN_EPS)
    shift = bn["beta"] - mean * scale
    return scale.reshape(1, -1).astype(jnp.float32), shift.reshape(1, -1).astype(jnp.float32)


def _bn_apply(z2, scale, shift, act, residual=None, out_dtype=jnp.bfloat16):
    M, C = z2.shape
    tm = _pick_rows(M, C, 3 if residual is not None else 2)
    call = _build_bn_apply(M, C, tm, act, residual is not None, jnp.dtype(out_dtype).name)
    if residual is not None:
        return call(z2, residual.astype(jnp.bfloat16), scale, shift)
    return call(z2, scale, shift)


def _conv3x3_bn(x_nhwc, cp, bn, act="relu", residual=None):
    """3x3 'same' conv + BatchNorm(batch stats) + act (+ fused residual add)."""
    N, H, W, Cin = x_nhwc.shape
    Cout = cp["cout"]
    M = N * H * W
    xp = jnp.pad(x_nhwc.astype(jnp.bfloat16), ((0, 0), (1, 1), (1, 1), (0, 0)))
    th = _halo_tile(N, H, W, Cin, Cout)
    if th is not None:
        z, stats = _build_conv3x3(N, H, W, Cin, Cout, th)(xp, cp["w9"], cp["b"])
    else:
        # Tiny / lane-unaligned maps: materialized im2col fallback (cheap here).
        patches = [xp[:, dy:dy + H, dx:dx + W, :]
                   for dy in range(3) for dx in range(3)]
        x2 = jnp.concatenate(patches, axis=-1).reshape(M, 9 * Cin)
        z, stats = _matmul(x2, cp["wmat"], cp["b"], emit_stats=True)
    scale, shift = _bn_affine(stats, float(M), bn)
    res2 = None if residual is None else residual.reshape(M, Cout)
    y = _bn_apply(z, scale, shift, act, residual=res2)
    return y.reshape(N, H, W, Cout)


def _conv1x1(x_nhwc, cp, act=None, out_dtype=jnp.bfloat16):
    N, H, W, Cin = x_nhwc.shape
    M = N * H * W
    z = _matmul(x_nhwc.reshape(M, Cin), cp["wmat"], cp["b"], act=act,
                emit_stats=False, out_dtype=out_dtype)
    return z.reshape(N, H, W, cp["cout"])


def _conv1x1_pair(xa2, xb2, cp, out_dtype=jnp.bfloat16):
    """Concat-free 1x1 conv: channels of xa first, then xb (matches torch.cat)."""
    M, Ka = xa2.shape
    Kb = xb2.shape[1]
    Cout = cp["cout"]
    budget = LIM["mm_budget"]
    wbytes = 2 * (Ka + Kb) * Cout * 2
    per_row = 2 * (Ka + Kb) * 2 + 2 * Cout * 2 + Cout * 4
    tm = _pick_tm(M, min(1024, max(8, (budget - wbytes) // per_row)))
    wa = cp["wmat"][:Ka]
    wb = cp["wmat"][Ka:]
    call = _build_mm2(M, Ka, Kb, Cout, tm, jnp.dtype(out_dtype).name)
    return call(xa2.astype(jnp.bfloat16), xb2.astype(jnp.bfloat16), wa, wb, cp["b"])


# --------------------------------------------------------------------------
# Model blocks
# --------------------------------------------------------------------------
def maxpool2(x):
    N, H, W, C = x.shape
    return x.reshape(N, H // 2, 2, W // 2, 2, C).max(axis=(2, 4))


def recurrent_block(x, p, final_residual=None):
    # PyTorch (t=2): x1 = conv(x); x1 = conv(x + x1); x1 = conv(x + x1)
    # The "x +" adds are fused into the previous conv's BN-apply epilogue.
    a = _conv3x3_bn(x, p["conv"], p["bn"], residual=x)        # = x + conv(x)
    b = _conv3x3_bn(a, p["conv"], p["bn"], residual=x)        # = x + conv(x + x1)
    return _conv3x3_bn(b, p["conv"], p["bn"], residual=final_residual)


def rrcnn_block(xin, p):
    if isinstance(xin, tuple):
        xa, xb = xin                                   # decoder: no torch.cat
        N, H, W, Ca = xa.shape
        M = N * H * W
        x2 = _conv1x1_pair(xa.reshape(M, Ca), xb.reshape(M, xb.shape[-1]), p["c1"])
        x = x2.reshape(N, H, W, p["c1"]["cout"])
    else:
        x = _conv1x1(xin, p["c1"])
    r1 = recurrent_block(x, p["r1"])
    # Final "x + RCNN(x)" fused into the last conv of the second recurrent block.
    return recurrent_block(r1, p["r2"], final_residual=x)


def up_conv_block(x, p):
    # TODO(synk): fold the nearest 2x upsample into the conv (4-phase convs)
    # to avoid materializing the 4x map in HBM.
    x = jnp.repeat(jnp.repeat(x, 2, axis=1), 2, axis=2)
    return _conv3x3_bn(x, p["conv"], p["bn"])


def attention_block(g, x, p):
    N, H, W, Cg = g.shape
    Cx = x.shape[-1]
    M = N * H * W
    g2 = g.reshape(M, Cg)
    x2 = x.reshape(M, Cx)
    zg, st_g = _matmul(g2, p["wg"]["wmat"], p["wg"]["b"], emit_stats=True)
    zx, st_x = _matmul(x2, p["wx"]["wmat"], p["wx"]["b"], emit_stats=True)
    sg, tg = _bn_affine(st_g, float(M), p["wg_bn"])
    sx, tx = _bn_affine(st_x, float(M), p["wx_bn"])
    Fint = zg.shape[1]
    tm = _pick_rows(M, Fint, 3)
    psi_raw, st_p = _build_att_head(M, Fint, tm)(
        zx, zg, sx, tx, sg, tg, p["psi_w"], p["psi_b"])
    sp, tp = _bn_affine(st_p, float(M), p["psi_bn"])
    tmg = _pick_rows(M, Cx, 2)
    out2 = _build_gate(M, Cx, tmg)(x2, psi_raw, sp, tp)
    return out2.reshape(N, H, W, Cx)


def r2attunet_forward(params, x_nchw):
    p = prepare_params(params)
    x = jnp.transpose(x_nchw, (0, 2, 3, 1)).astype(jnp.bfloat16)  # NCHW -> NHWC

    x1 = rrcnn_block(x, p["RRCNN1"])
    x2 = rrcnn_block(maxpool2(x1), p["RRCNN2"])
    x3 = rrcnn_block(maxpool2(x2), p["RRCNN3"])
    x4 = rrcnn_block(maxpool2(x3), p["RRCNN4"])
    x5 = rrcnn_block(maxpool2(x4), p["RRCNN5"])

    d5 = up_conv_block(x5, p["Up5"])
    x4a = attention_block(d5, x4, p["Att5"])
    d5 = rrcnn_block((x4a, d5), p["Up_RRCNN5"])

    d4 = up_conv_block(d5, p["Up4"])
    x3a = attention_block(d4, x3, p["Att4"])
    d4 = rrcnn_block((x3a, d4), p["Up_RRCNN4"])

    d3 = up_conv_block(d4, p["Up3"])
    x2a = attention_block(d3, x2, p["Att3"])
    d3 = rrcnn_block((x2a, d3), p["Up_RRCNN3"])

    d2 = up_conv_block(d3, p["Up2"])
    x1a = attention_block(d2, x1, p["Att2"])
    d2 = rrcnn_block((x1a, d2), p["Up_RRCNN2"])

    d1 = _conv1x1(d2, p["Conv_1x1"], act=None, out_dtype=jnp.float32)
    return jnp.transpose(d1, (0, 3, 1, 2))  # NHWC -> NCHW


# --------------------------------------------------------------------------
# Parameter preparation (pre-packed bf16 weights)
# --------------------------------------------------------------------------
def _prep_conv(cp):
    w = jnp.asarray(cp["w"])
    b = jnp.asarray(cp["b"])
    Cout, Cin, kh, kw = w.shape
    if kh == 1:
        wmat = w.reshape(Cout, Cin).T.astype(jnp.bfloat16)           # (Cin, Cout)
        w9 = None
    else:
        wmat = jnp.transpose(w, (2, 3, 1, 0)).reshape(kh * kw * Cin, Cout)
        wmat = wmat.astype(jnp.bfloat16)                             # (9*Cin, Cout)
        w9 = wmat.reshape(kh * kw, Cin, Cout)
    return {"wmat": wmat, "w9": w9,
            "b": b.reshape(1, Cout).astype(jnp.float32),
            "cin": int(Cin), "cout": int(Cout)}


def _prep_bn(bn):
    return {"gamma": jnp.asarray(bn["gamma"], jnp.float32),
            "beta": jnp.asarray(bn["beta"], jnp.float32)}


def prepare_params(params):
    def rrcnn(q):
        return {"c1": _prep_conv(q["c1"]),
                "r1": {"conv": _prep_conv(q["r1"]["conv"]), "bn": _prep_bn(q["r1"]["bn"])},
                "r2": {"conv": _prep_conv(q["r2"]["conv"]), "bn": _prep_bn(q["r2"]["bn"])}}

    def up(q):
        return {"conv": _prep_conv(q["conv"]), "bn": _prep_bn(q["bn"])}

    def att(q):
        return {"wg": _prep_conv(q["wg"]), "wg_bn": _prep_bn(q["wg_bn"]),
                "wx": _prep_conv(q["wx"]), "wx_bn": _prep_bn(q["wx_bn"]),
                "psi_w": jnp.asarray(q["psi"]["w"]).reshape(1, -1).astype(jnp.float32),
                "psi_b": jnp.asarray(q["psi"]["b"]).reshape(1, 1).astype(jnp.float32),
                "psi_bn": _prep_bn(q["psi_bn"])}

    out = {}
    for name in ("RRCNN1", "RRCNN2", "RRCNN3", "RRCNN4", "RRCNN5",
                 "Up_RRCNN5", "Up_RRCNN4", "Up_RRCNN3", "Up_RRCNN2"):
        out[name] = rrcnn(params[name])
    for name in ("Up5", "Up4", "Up3", "Up2"):
        out[name] = up(params[name])
    for name in ("Att5", "Att4", "Att3", "Att2"):
        out[name] = att(params[name])
    out["Conv_1x1"] = _prep_conv(params["Conv_1x1"])
    return out


# --------------------------------------------------------------------------
# Deterministic parameter initialization
# --------------------------------------------------------------------------
class KeyGen:
    def __init__(self, seed):
        self.key = jax.random.PRNGKey(seed)

    def __call__(self):
        self.key, k = jax.random.split(self.key)
        return k


def init_conv(kg, cin, cout, ksz):
    fan_in = cin * ksz * ksz
    w = jax.random.normal(kg(), (cout, cin, ksz, ksz), jnp.float32) / np.sqrt(fan_in)
    b = 0.01 * jax.random.normal(kg(), (cout,), jnp.float32)
    return {"w": w, "b": b}


def init_bn(kg, c):
    gamma = 1.0 + 0.1 * jax.random.normal(kg(), (c,), jnp.float32)
    beta = 0.1 * jax.random.normal(kg(), (c,), jnp.float32)
    return {"gamma": gamma, "beta": beta}


def init_rrcnn(kg, cin, cout):
    return {"c1": init_conv(kg, cin, cout, 1),
            "r1": {"conv": init_conv(kg, cout, cout, 3), "bn": init_bn(kg, cout)},
            "r2": {"conv": init_conv(kg, cout, cout, 3), "bn": init_bn(kg, cout)}}


def init_upconv(kg, cin, cout):
    return {"conv": init_conv(kg, cin, cout, 3), "bn": init_bn(kg, cout)}


def init_att(kg, fg, fl, fint):
    return {"wg": init_conv(kg, fg, fint, 1), "wg_bn": init_bn(kg, fint),
            "wx": init_conv(kg, fl, fint, 1), "wx_bn": init_bn(kg, fint),
            "psi": init_conv(kg, fint, 1, 1), "psi_bn": init_bn(kg, 1)}


def init_params(seed=0, img_ch=3, output_ch=1):
    kg = KeyGen(seed)
    p = {}
    p["RRCNN1"] = init_rrcnn(kg, img_ch, 64)
    p["RRCNN2"] = init_rrcnn(kg, 64, 128)
    p["RRCNN3"] = init_rrcnn(kg, 128, 256)
    p["RRCNN4"] = init_rrcnn(kg, 256, 512)
    p["RRCNN5"] = init_rrcnn(kg, 512, 1024)
    p["Up5"] = init_upconv(kg, 1024, 512)
    p["Att5"] = init_att(kg, 512, 512, 256)
    p["Up_RRCNN5"] = init_rrcnn(kg, 1024, 512)
    p["Up4"] = init_upconv(kg, 512, 256)
    p["Att4"] = init_att(kg, 256, 256, 128)
    p["Up_RRCNN4"] = init_rrcnn(kg, 512, 256)
    p["Up3"] = init_upconv(kg, 256, 128)
    p["Att3"] = init_att(kg, 128, 128, 64)
    p["Up_RRCNN3"] = init_rrcnn(kg, 256, 128)
    p["Up2"] = init_upconv(kg, 128, 64)
    p["Att2"] = init_att(kg, 64, 64, 32)
    p["Up_RRCNN2"] = init_rrcnn(kg, 128, 64)
    p["Conv_1x1"] = init_conv(kg, 64, output_ch, 1)
    return p


# --------------------------------------------------------------------------
if __name__ == "__main__":
    params = init_params(seed=0, img_ch=3, output_ch=1)
    x = jax.random.normal(jax.random.PRNGKey(0), (2, 3, 16, 16), jnp.float32)
    out = r2attunet_forward(params, x)
    out = jax.block_until_ready(out)
    assert out.shape == (2, 1, 16, 16), out.shape
    assert bool(jnp.all(jnp.isfinite(out)))
    print("KERNEL_OK")
</pallas_src>

<mosaic_0001>
module attributes {stable_mosaic.version = 11 : i64} {
  func.func @_mm_kernel(%arg0: i32, %arg1: i32, %arg2: memref<512x3xbf16, #tpu.memory_space<vmem>>, %arg3: memref<3x64xbf16, #tpu.memory_space<vmem>>, %arg4: memref<1x64xf32, #tpu.memory_space<vmem>>, %arg5: memref<512x64xbf16, #tpu.memory_space<vmem>>, %arg6: memref<512x64xf32, #tpu.memory_space<vmem>>) attributes {dimension_semantics = [#tpu.dimension_semantics<parallel>, #tpu.dimension_semantics<arbitrary>], iteration_bounds = array<i64: 1, 1>, scalar_prefetch = 0 : i64, scratch_operands = 1 : i64, tpu.core_type = #tpu.core_type<tc>, window_params = [{transform_indices = @transform_0, window_bounds = array<i64: 512, 3>}, {transform_indices = @transform_1, window_bounds = array<i64: 3, 64>}, {pipeline_mode = #tpu.pipeline_mode<synchronous>, transform_indices = @transform_2, window_bounds = array<i64: 1, 64>}, {transform_indices = @transform_3, window_bounds = array<i64: 512, 64>}]} {
    %c0_i32 = arith.constant 0 : i32
    %0 = arith.cmpi eq, %arg1, %c0_i32 : i32
    %1 = arith.extui %0 : i1 to i32
    %c0_i32_0 = arith.constant 0 : i32
    %2 = arith.cmpi ne, %1, %c0_i32_0 : i32
    scf.if %2 {
      %cst_10 = arith.constant 0.000000e+00 : f32
      %12 = vector.broadcast %cst_10 : f32 to vector<512x64xf32>
      %c0_11 = arith.constant 0 : index
      %c0_12 = arith.constant 0 : index
      %13 = vector.load %arg6[%c0_11, %c0_12] : memref<512x64xf32, #tpu.memory_space<vmem>>, vector<512x64xf32>
      tpu.vector_store %arg6[%c0_11, %c0_12], %12 {strides = array<i32>} : memref<512x64xf32, #tpu.memory_space<vmem>>, vector<512x64xf32>,
    } else {
    }
    %c0 = arith.constant 0 : index
    %c0_1 = arith.constant 0 : index
    %3 = vector.load %arg6[%c0, %c0_1] : memref<512x64xf32, #tpu.memory_space<vmem>>, vector<512x64xf32>
    %c0_2 = arith.constant 0 : index
    %c0_3 = arith.constant 0 : index
    %4 = vector.load %arg2[%c0_2, %c0_3] : memref<512x3xbf16, #tpu.memory_space<vmem>>, vector<512x3xbf16>
    %c0_4 = arith.constant 0 : index
    %c0_5 = arith.constant 0 : index
    %5 = vector.load %arg3[%c0_4, %c0_5] : memref<3x64xbf16, #tpu.memory_space<vmem>>, vector<3x64xbf16>
    %cst = arith.constant dense<0.000000e+00> : vector<512x64xf32>
    %6 = tpu.matmul %4, %5, %cst {dimension_numbers = #tpu.dot_dimension_numbers<[1], [0], [0], [1], [0, 0, 1, 1], [], []>} : vector<512x3xbf16>, vector<3x64xbf16>, vector<512x64xf32> -> vector<512x64xf32>
    %7 = arith.addf %3, %6 : vector<512x64xf32>
    %c0_6 = arith.constant 0 : index
    %c0_7 = arith.constant 0 : index
    %8 = vector.load %arg6[%c0_6, %c0_7] : memref<512x64xf32, #tpu.memory_space<vmem>>, vector<512x64xf32>
    tpu.vector_store %arg6[%c0_6, %c0_7], %7 {strides = array<i32>} : memref<512x64xf32, #tpu.memory_space<vmem>>, vector<512x64xf32>,
    %c0_i32_8 = arith.constant 0 : i32
    %9 = arith.cmpi eq, %arg1, %c0_i32_8 : i32
    %10 = arith.extui %9 : i1 to i32
    %c0_i32_9 = arith.constant 0 : i32
    %11 = arith.cmpi ne, %10, %c0_i32_9 : i32
    scf.if %11 {
      %c0_10 = arith.constant 0 : index
      %c0_11 = arith.constant 0 : index
      %12 = vector.load %arg6[%c0_10, %c0_11] : memref<512x64xf32, #tpu.memory_space<vmem>>, vector<512x64xf32>
      %c0_12 = arith.constant 0 : index
      %c0_13 = arith.constant 0 : index
      %13 = vector.load %arg4[%c0_12, %c0_13] : memref<1x64xf32, #tpu.memory_space<vmem>>, vector<1x64xf32>
      %14 = vector.broadcast %13 : vector<1x64xf32> to vector<512x64xf32>
      %15 = arith.addf %12, %14 : vector<512x64xf32>
      %16 = arith.truncf %15 : vector<512x64xf32> to vector<512x64xbf16>
      %c0_14 = arith.constant 0 : index
      %c0_15 = arith.constant 0 : index
      %17 = vector.load %arg5[%c0_14, %c0_15] : memref<512x64xbf16, #tpu.memory_space<vmem>>, vector<512x64xbf16>
      tpu.vector_store %arg5[%c0_14, %c0_15], %16 {strides = array<i32>} : memref<512x64xbf16, #tpu.memory_space<vmem>>, vector<512x64xbf16>,
    } else {
    }
    return
  }
  func.func @transform_0(%arg0: i32, %arg1: i32) -> (i32, i32) {
    %c0_i32 = arith.constant 0 : i32
    return %arg0, %arg1 : i32, i32
  }
  func.func @transform_1(%arg0: i32, %arg1: i32) -> (i32, i32) {
    %c0_i32 = arith.constant 0 : i32
    %c0_i32_0 = arith.constant 0 : i32
    return %arg1, %c0_i32 : i32, i32
  }
  func.func @transform_2(%arg0: i32, %arg1: i32) -> (i32, i32) {
    %c0_i32 = arith.constant 0 : i32
    %c0_i32_0 = arith.constant 0 : i32
    %c0_i32_1 = arith.constant 0 : i32
    return %c0_i32, %c0_i32_0 : i32, i32
  }
  func.func @transform_3(%arg0: i32, %arg1: i32) -> (i32, i32) {
    %c0_i32 = arith.constant 0 : i32
    %c0_i32_0 = arith.constant 0 : i32
    return %arg0, %c0_i32 : i32, i32
  }
}

</mosaic_0001>

<bundles_post_ra>
// kernel: tpu_custom_call.1
= control target key start
LH: loop header
LB: loop body
LE: loop exit
PB: predicated region body
PF: predicated region fallthrough
CT: control target
= control target key end

     0   :  { %vm470_vm0 = vcmask 1040384   ;;  %vm471_vm1 = vcmask 1041408   ;;  %vm373_vm2 = vcmask 23552   ;;  %v1686_v1 = vmov 65535   ;;  %s2365_s1 = inlined_call_operand.vmem [shape: bf16[3,64], index: 1, kind: input, shape index: {}]   ;;  %s2366_s0 = inlined_call_operand.vmem [shape: bf16[512,3], index: 0, kind: input, shape index: {}]   ;;  %s2367_s2 = inlined_call_operand.vmem [shape: f32[1,64], index: 2, kind: input, shape index: {}]   ;;  %s2368_s3 = inlined_call_operand.vmem [shape: bf16[512,64], index: 3, kind: output, shape index: {}]  }
   0x1   :  { %v212_v0 = vld [vmem:[%s2365_s1] sm:$0x3]  ;;  %v472_v2 = vsel %vm470_vm0, 4294967295, %v1686_v1  ;;  %v1722_v7 = vld [vmem:[%s2366_s0 + $0x8] sm:$0xff]   ;;  %vm19_vm3 = vcmask 523264   ;;  %v1732_v9 = vld [vmem:[%s2366_s0 + $0x10] sm:$0xff]  }
   0x2   :  { %v1654_v3 = vld [vmem:[%s2366_s0] sm:$0xff]   ;;  %v473_v4 = vsel %vm471_vm1, %v472_v2, 0  ;;  %v1727_v8 = vld [vmem:[%s2366_s0 + $0x88] sm:$0xff]   ;;  %v1687_v10 = vmov 0.0   ;;  %v1659_v11 = vld [vmem:[%s2366_s0 + $0x90] sm:$0xff]   ;;  %vm1289_vm4 = vcmask 519168  }
   0x3   :  { %v1655_v5 = vld [vmem:[%s2366_s0 + $0x80] sm:$0xff]   ;;  %v475_v6 = vand.u32 %v473_v4, %v212_v0  ;;  %1586 = vmatprep.mubr.msk.bf16.mxu0 %vm373_vm2, %v1654_v3  ;;  %22 = vst.msk [vmem:[#allocation2 + $0x10] sm:$0xff] %vm19_vm3, %v1687_v10  ;;  %20 = vst.msk [vmem:[#allocation2] sm:$0xff] %vm19_vm3, %v1687_v10  ;;  %v1660_v12 = vld [vmem:[%s2366_s0 + $0x18] sm:$0xff]  }
   0x4   :  { %1618 = vmatprep.mubr.msk.bf16.mxu1 %vm373_vm2, %v1655_v5  ;;  %21 = vst.msk [vmem:[#allocation2 + $0x8] sm:$0xff] %vm19_vm3, %v1687_v10  ;;  %23 = vst.msk [vmem:[#allocation2 + $0x18] sm:$0xff] %vm19_vm3, %v1687_v10  ;;  %v1661_v13 = vld [vmem:[%s2366_s0 + $0x98] sm:$0xff]   ;;  %v1662_v14 = vld [vmem:[%s2366_s0 + $0x20] sm:$0xff]  }
   0x5   :  { %1584 = vmatprep.subr.bf16.mxu0 %v475_v6  ;;  %1650 = vmatprep.subr.bf16.mxu1 %v475_v6  ;;  %24 = vst.msk [vmem:[#allocation2 + $0x20] sm:$0xff] %vm19_vm3, %v1687_v10  ;;  %25 = vst.msk [vmem:[#allocation2 + $0x28] sm:$0xff] %vm19_vm3, %v1687_v10  ;;  %v1663_v15 = vld [vmem:[%s2366_s0 + $0xa0] sm:$0xff]   ;;  %v1664_v16 = vld [vmem:[%s2366_s0 + $0x28] sm:$0xff]  }
   0x6   :  { %1585 = vmatpush3.bf16.msra.mxu0 %v475_v6  ;;  %1651 = vmatpush3.bf16.msra.mxu1 %v475_v6  ;;  %26 = vst.msk [vmem:[#allocation2 + $0x30] sm:$0xff] %vm19_vm3, %v1687_v10  ;;  %27 = vst.msk [vmem:[#allocation2 + $0x38] sm:$0xff] %vm19_vm3, %v1687_v10  ;;  %v1665_v17 = vld [vmem:[%s2366_s0 + $0xa8] sm:$0xff]   ;;  %v1666_v18 = vld [vmem:[%s2366_s0 + $0x30] sm:$0xff]  }
   0x7   :  { %28 = vst.msk [vmem:[#allocation2 + $0x40] sm:$0xff] %vm19_vm3, %v1687_v10  ;;  %29 = vst.msk [vmem:[#allocation2 + $0x48] sm:$0xff] %vm19_vm3, %v1687_v10  ;;  %v1667_v19 = vld [vmem:[%s2366_s0 + $0xb0] sm:$0xff]   ;;  %v1668_v20 = vld [vmem:[%s2366_s0 + $0x38] sm:$0xff]  }
   0x8   :  { %30 = vst.msk [vmem:[#allocation2 + $0x50] sm:$0xff] %vm19_vm3, %v1687_v10  ;;  %31 = vst.msk [vmem:[#allocation2 + $0x58] sm:$0xff] %vm19_vm3, %v1687_v10  ;;  %v1669_v21 = vld [vmem:[%s2366_s0 + $0xb8] sm:$0xff]   ;;  %v1670_v22 = vld [vmem:[%s2366_s0 + $0x40] sm:$0xff]  }
   0x9   :  { %32 = vst.msk [vmem:[#allocation2 + $0x60] sm:$0xff] %vm19_vm3, %v1687_v10  ;;  %33 = vst.msk [vmem:[#allocation2 + $0x68] sm:$0xff] %vm19_vm3, %v1687_v10  ;;  %1587 = vmatmul.mubr.msk.bf16.vlgmr.msra.gmra.mrb[0].mxu0 %vm373_vm2, %v1722_v7  ;;  %1619 = vmatmul.mubr.msk.bf16.vlgmr.msra.gmra.mrb[0].mxu1 %vm373_vm2, %v1727_v8  ;;  %v1671_v23 = vld [vmem:[%s2366_s0 + $0xc0] sm:$0xff]   ;;  %v1672_v24 = vld [vmem:[%s2366_s0 + $0x48] sm:$0xff]  }
   0xa   :  { %34 = vst.msk [vmem:[#allocation2 + $0x70] sm:$0xff] %vm19_vm3, %v1687_v10  ;;  %35 = vst.msk [vmem:[#allocation2 + $0x78] sm:$0xff] %vm19_vm3, %v1687_v10  ;;  %1590 = vmatprep.mubr.msk.bf16.mxu0 %vm373_vm2, %v1732_v9  ;;  %1622 = vmatprep.mubr.msk.bf16.mxu1 %vm373_vm2, %v1659_v11  ;;  %v1673_v25 = vld [vmem:[%s2366_s0 + $0xc8] sm:$0xff]   ;;  %v1674_v26 = vld [vmem:[%s2366_s0 + $0x50] sm:$0xff]  }
   0xb   :  { %36 = vst.msk [vmem:[#allocation2 + $0x80] sm:$0xff] %vm19_vm3, %v1687_v10  ;;  %37 = vst.msk [vmem:[#allocation2 + $0x88] sm:$0xff] %vm19_vm3, %v1687_v10  ;;  %v1675_v27 = vld [vmem:[%s2366_s0 + $0xd0] sm:$0xff]   ;;  %v1676_v28 = vld [vmem:[%s2366_s0 + $0x58] sm:$0xff]  }
   0xc   :  { %38 = vst.msk [vmem:[#allocation2 + $0x90] sm:$0xff] %vm19_vm3, %v1687_v10  ;;  %39 = vst.msk [vmem:[#allocation2 + $0x98] sm:$0xff] %vm19_vm3, %v1687_v10  ;;  %v1677_v29 = vld [vmem:[%s2366_s0 + $0xd8] sm:$0xff]   ;;  %v1678_v30 = vld [vmem:[%s2366_s0 + $0x60] sm:$0xff]  }
   0xd   :  { %40 = vst.msk [vmem:[#allocation2 + $0xa0] sm:$0xff] %vm19_vm3, %v1687_v10  ;;  %41 = vst.msk [vmem:[#allocation2 + $0xa8] sm:$0xff] %vm19_vm3, %v1687_v10  ;;  %v1679_v31 = vld [vmem:[%s2366_s0 + $0xe0] sm:$0xff]   ;;  %v1680_v32 = vld [vmem:[%s2366_s0 + $0x68] sm:$0xff]  }
   0xe   :  { %42 = vst.msk [vmem:[#allocation2 + $0xb0] sm:$0xff] %vm19_vm3, %v1687_v10  ;;  %43 = vst.msk [vmem:[#allocation2 + $0xb8] sm:$0xff] %vm19_vm3, %v1687_v10  ;;  %v1681_v33 = vld [vmem:[%s2366_s0 + $0xe8] sm:$0xff]   ;;  %v1682_v34 = vld [vmem:[%s2366_s0 + $0x70] sm:$0xff]  }
   0xf   :  { %44 = vst.msk [vmem:[#allocation2 + $0xc0] sm:$0xff] %vm19_vm3, %v1687_v10  ;;  %45 = vst.msk [vmem:[#allocation2 + $0xc8] sm:$0xff] %vm19_vm3, %v1687_v10  ;;  %v1683_v35 = vld [vmem:[%s2366_s0 + $0xf0] sm:$0xff]   ;;  %v1684_v36 = vld [vmem:[%s2366_s0 + $0x78] sm:$0xff]  }
  0x10   :  { %46 = vst.msk [vmem:[#allocation2 + $0xd0] sm:$0xff] %vm19_vm3, %v1687_v10  ;;  %47 = vst.msk [vmem:[#allocation2 + $0xd8] sm:$0xff] %vm19_vm3, %v1687_v10  ;;  %v1685_v37 = vld [vmem:[%s2366_s0 + $0xf8] sm:$0xff]   ;;  %v86_v38 = vld [vmem:[#allocation2 + $0x10] sm:$0xff] }
  0x11   :  { %48 = vst.msk [vmem:[#allocation2 + $0xe0] sm:$0xff] %vm19_vm3, %v1687_v10  ;;  %49 = vst.msk [vmem:[#allocation2 + $0xe8] sm:$0xff] %vm19_vm3, %v1687_v10  ;;  %1591 = vmatmul.mubr.msk.bf16.gmra.mrb[4].mxu0 %vm373_vm2, %v1660_v12  ;;  %1623 = vmatmul.mubr.msk.bf16.gmra.mrb[4].mxu1 %vm373_vm2, %v1661_v13  ;;  %v84_v40 = vld [vmem:[#allocation2] sm:$0xff]  ;;  %v87_v44 = vld [vmem:[#allocation2 + $0x18] sm:$0xff] }
  0x12   :  { %50 = vst.msk [vmem:[#allocation2 + $0xf0] sm:$0xff] %vm19_vm3, %v1687_v10  ;;  %51 = vst.msk [vmem:[#allocation2 + $0xf8] sm:$0xff] %vm19_vm3, %v1687_v10  ;;  %1594 = vmatprep.mubr.msk.bf16.mxu0 %vm373_vm2, %v1662_v14  ;;  %1626 = vmatprep.mubr.msk.bf16.mxu1 %vm373_vm2, %v1663_v15  ;;  %v85_v50 = vld [vmem:[#allocation2 + $0x8] sm:$0xff]  ;;  %v90_v62 = vld [vmem:[#allocation2 + $0x30] sm:$0xff] }
  0x13   :  { %52 = vst.msk [vmem:[#allocation2 + $0x100] sm:$0xff] %vm19_vm3, %v1687_v10  ;;  %53 = vst.msk [vmem:[#allocation2 + $0x108] sm:$0xff] %vm19_vm3, %v1687_v10  ;;  %v88_v0 = vld [vmem:[#allocation2 + $0x20] sm:$0xff]  ;;  %v91_v5 = vld [vmem:[#allocation2 + $0x38] sm:$0xff] }
  0x14   :  { %54 = vst.msk [vmem:[#allocation2 + $0x110] sm:$0xff] %vm19_vm3, %v1687_v10  ;;  %55 = vst.msk [vmem:[#allocation2 + $0x118] sm:$0xff] %vm19_vm3, %v1687_v10  ;;  %v1987_v2 = vld [vmem:[%s2367_s2] ss:$0 sm:$0xff]  ;;  %v89_v11 = vld [vmem:[#allocation2 + $0x28] sm:$0xff] }
  0x15   :  { %56 = vst.msk [vmem:[#allocation2 + $0x120] sm:$0xff] %vm19_vm3, %v1687_v10  ;;  %57 = vst.msk [vmem:[#allocation2 + $0x128] sm:$0xff] %vm19_vm3, %v1687_v10 }
  0x16   :  { %58 = vst.msk [vmem:[#allocation2 + $0x130] sm:$0xff] %vm19_vm3, %v1687_v10  ;;  %59 = vst.msk [vmem:[#allocation2 + $0x138] sm:$0xff] %vm19_vm3, %v1687_v10 }
  0x17   :  { %60 = vst.msk [vmem:[#allocation2 + $0x140] sm:$0xff] %vm19_vm3, %v1687_v10  ;;  %61 = vst.msk [vmem:[#allocation2 + $0x148] sm:$0xff] %vm19_vm3, %v1687_v10 }
  0x18   :  { %62 = vst.msk [vmem:[#allocation2 + $0x150] sm:$0xff] %vm19_vm3, %v1687_v10  ;;  %63 = vst.msk [vmem:[#allocation2 + $0x158] sm:$0xff] %vm19_vm3, %v1687_v10 }
  0x19   :  { %64 = vst.msk [vmem:[#allocation2 + $0x160] sm:$0xff] %vm19_vm3, %v1687_v10  ;;  %65 = vst.msk [vmem:[#allocation2 + $0x168] sm:$0xff] %vm19_vm3, %v1687_v10  ;;  %1595 = vmatmul.mubr.msk.bf16.gmra.mrb[8].mxu0 %vm373_vm2, %v1664_v16  ;;  %1627 = vmatmul.mubr.msk.bf16.gmra.mrb[8].mxu1 %vm373_vm2, %v1665_v17 }
  0x1a   :  { %66 = vst.msk [vmem:[#allocation2 + $0x170] sm:$0xff] %vm19_vm3, %v1687_v10  ;;  %67 = vst.msk [vmem:[#allocation2 + $0x178] sm:$0xff] %vm19_vm3, %v1687_v10  ;;  %1598 = vmatprep.mubr.msk.bf16.mxu0 %vm373_vm2, %v1666_v18  ;;  %1630 = vmatprep.mubr.msk.bf16.mxu1 %vm373_vm2, %v1667_v19  ;;  %v116_v41 = vld [vmem:[#allocation2 + $0x100] sm:$0xff]  ;;  %v117_v51 = vld [vmem:[#allocation2 + $0x108] sm:$0xff] }
  0x1b   :  { %68 = vst.msk [vmem:[#allocation2 + $0x180] sm:$0xff] %vm19_vm3, %v1687_v10  ;;  %69 = vst.msk [vmem:[#allocation2 + $0x188] sm:$0xff] %vm19_vm3, %v1687_v10  ;;  %v118_v39 = vld [vmem:[#allocation2 + $0x110] sm:$0xff]  ;;  %v119_v45 = vld [vmem:[#allocation2 + $0x118] sm:$0xff] }
  0x1c   :  { %70 = vst.msk [vmem:[#allocation2 + $0x190] sm:$0xff] %vm19_vm3, %v1687_v10  ;;  %71 = vst.msk [vmem:[#allocation2 + $0x198] sm:$0xff] %vm19_vm3, %v1687_v10  ;;  %v120_v1 = vld [vmem:[#allocation2 + $0x120] sm:$0xff]  ;;  %v121_v12 = vld [vmem:[#allocation2 + $0x128] sm:$0xff] }
  0x1d   :  { %72 = vst.msk [vmem:[#allocation2 + $0x1a0] sm:$0xff] %vm19_vm3, %v1687_v10  ;;  %73 = vst.msk [vmem:[#allocation2 + $0x1a8] sm:$0xff] %vm19_vm3, %v1687_v10  ;;  %v122_v63 = vld [vmem:[#allocation2 + $0x130] sm:$0xff]  ;;  %v123_v6 = vld [vmem:[#allocation2 + $0x138] sm:$0xff] }
  0x1e   :  { %74 = vst.msk [vmem:[#allocation2 + $0x1b0] sm:$0xff] %vm19_vm3, %v1687_v10  ;;  %75 = vst.msk [vmem:[#allocation2 + $0x1b8] sm:$0xff] %vm19_vm3, %v1687_v10 }
  0x1f   :  { %76 = vst.msk [vmem:[#allocation2 + $0x1c0] sm:$0xff] %vm19_vm3, %v1687_v10  ;;  %77 = vst.msk [vmem:[#allocation2 + $0x1c8] sm:$0xff] %vm19_vm3, %v1687_v10 }
  0x20   :  { %78 = vst.msk [vmem:[#allocation2 + $0x1d0] sm:$0xff] %vm19_vm3, %v1687_v10  ;;  %79 = vst.msk [vmem:[#allocation2 + $0x1d8] sm:$0xff] %vm19_vm3, %v1687_v10 }
  0x21   :  { %80 = vst.msk [vmem:[#allocation2 + $0x1e0] sm:$0xff] %vm19_vm3, %v1687_v10  ;;  %81 = vst.msk [vmem:[#allocation2 + $0x1e8] sm:$0xff] %vm19_vm3, %v1687_v10  ;;  %1599 = vmatmul.mubr.msk.bf16.gmra.mrb[12].mxu0 %vm373_vm2, %v1668_v20  ;;  %1631 = vmatmul.mubr.msk.bf16.gmra.mrb[12].mxu1 %vm373_vm2, %v1669_v21 }
  0x22   :  { %82 = vst.msk [vmem:[#allocation2 + $0x1f0] sm:$0xff] %vm19_vm3, %v1687_v10  ;;  %83 = vst.msk [vmem:[#allocation2 + $0x1f8] sm:$0xff] %vm19_vm3, %v1687_v10  ;;  %1602 = vmatprep.mubr.msk.bf16.mxu0 %vm373_vm2, %v1670_v22  ;;  %1634 = vmatprep.mubr.msk.bf16.mxu1 %vm373_vm2, %v1671_v23 }
  0x29   :  { %1603 = vmatmul.mubr.msk.bf16.gmra.mrb[16].mxu0 %vm373_vm2, %v1672_v24  ;;  %1635 = vmatmul.mubr.msk.bf16.gmra.mrb[16].mxu1 %vm373_vm2, %v1673_v25 }
  0x2a   :  { %1606 = vmatprep.mubr.msk.bf16.mxu0 %vm373_vm2, %v1674_v26  ;;  %1638 = vmatprep.mubr.msk.bf16.mxu1 %vm373_vm2, %v1675_v27 }
  0x31   :  { %1607 = vmatmul.mubr.msk.bf16.gmra.mrb[20].mxu0 %vm373_vm2, %v1676_v28  ;;  %1639 = vmatmul.mubr.msk.bf16.gmra.mrb[20].mxu1 %vm373_vm2, %v1677_v29 }
  0x32   :  { %1610 = vmatprep.mubr.msk.bf16.mxu0 %vm373_vm2, %v1678_v30  ;;  %1642 = vmatprep.mubr.msk.bf16.mxu1 %vm373_vm2, %v1679_v31 }
  0x39   :  { %1611 = vmatmul.mubr.msk.bf16.gmra.mrb[24].mxu0 %vm373_vm2, %v1680_v32  ;;  %1643 = vmatmul.mubr.msk.bf16.gmra.mrb[24].mxu1 %vm373_vm2, %v1681_v33 }
  0x3a   :  { %1614 = vmatprep.mubr.msk.bf16.mxu0 %vm373_vm2, %v1682_v34  ;;  %1646 = vmatprep.mubr.msk.bf16.mxu1 %vm373_vm2, %v1683_v35 }
  0x41   :  { %1615 = vmatmul.mubr.msk.bf16.gmra.mrb[28].mxu0 %vm373_vm2, %v1684_v36  ;;  %1647 = vmatmul.mubr.msk.bf16.gmra.mrb[28].mxu1 %vm373_vm2, %v1685_v37 }
  0xdc   :  { %v1588_v42 = vpop.f32.mrb[0].mxu0  ;;  %v1620_v43 = vpop.f32.mrb[0].mxu1 }
  0xdd   :  { %v768_v46 = vadd.f32 %v1588_v42, %v86_v38  ;;  %v800_v47 = vadd.f32 %v1620_v43, %v118_v39  ;;  %v511_v48 = vpop.f32.mrb[1].mxu0  ;;  %v639_v49 = vpop.f32.mrb[1].mxu1  ;;  %v94_v43 = vld [vmem:[#allocation2 + $0x50] sm:$0xff] }
  0xde   :  { %v766_v52 = vadd.f32 %v511_v48, %v84_v40  ;;  %v798_v53 = vadd.f32 %v639_v49, %v116_v41  ;;  %v1589_v54 = vpop.f32.mrb[2].mxu0  ;;  %v1621_v55 = vpop.f32.mrb[2].mxu1  ;;  %v124_v48 = vld [vmem:[#allocation2 + $0x140] sm:$0xff] }
  0xdf   :  { %833 = vst.msk [vmem:[#allocation2 + $0x10] sm:$0xff] %vm19_vm3, %v768_v46  ;;  %865 = vst.msk [vmem:[#allocation2 + $0x110] sm:$0xff] %vm19_vm3, %v800_v47  ;;  %v769_v56 = vadd.f32 %v1589_v54, %v87_v44  ;;  %v801_v57 = vadd.f32 %v1621_v55, %v119_v45  ;;  %v514_v58 = vpop.f32.mrb[3].mxu0  ;;  %v642_v59 = vpop.f32.mrb[3].mxu1  ;;  %v126_v44 = vld [vmem:[#allocation2 + $0x150] sm:$0xff]  ;;  %v92_v47 = vld [vmem:[#allocation2 + $0x40] sm:$0xff] }
  0xe0   :  { %831 = vst.msk [vmem:[#allocation2] sm:$0xff] %vm19_vm3, %v766_v52  ;;  %863 = vst.msk [vmem:[#allocation2 + $0x100] sm:$0xff] %vm19_vm3, %v798_v53  ;;  %v767_v60 = vadd.f32 %v514_v58, %v85_v50  ;;  %v799_v61 = vadd.f32 %v642_v59, %v117_v51  ;;  %v95_v53 = vld [vmem:[#allocation2 + $0x58] sm:$0xff]  ;;  %v93_v59 = vld [vmem:[#allocation2 + $0x48] sm:$0xff] }
  0xe1   :  { %834 = vst.msk [vmem:[#allocation2 + $0x18] sm:$0xff] %vm19_vm3, %v769_v56  ;;  %866 = vst.msk [vmem:[#allocation2 + $0x118] sm:$0xff] %vm19_vm3, %v801_v57  ;;  %v127_v54 = vld [vmem:[#allocation2 + $0x158] sm:$0xff] }
  0xe2   :  { %832 = vst.msk [vmem:[#allocation2 + $0x8] sm:$0xff] %vm19_vm3, %v767_v60  ;;  %864 = vst.msk [vmem:[#allocation2 + $0x108] sm:$0xff] %vm19_vm3, %v799_v61  ;;  %v125_v60 = vld [vmem:[#allocation2 + $0x148] sm:$0xff] }
  0xe4   :  { %v1592_v3 = vpop.f32.mrb[4].mxu0  ;;  %v1624_v4 = vpop.f32.mrb[4].mxu1 }
  0xe5   :  { %v772_v7 = vadd.f32 %v1592_v3, %v90_v62  ;;  %v804_v8 = vadd.f32 %v1624_v4, %v122_v63  ;;  %v527_v9 = vpop.f32.mrb[5].mxu0  ;;  %v655_v10 = vpop.f32.mrb[5].mxu1 }
  0xe6   :  { %v900_v13 = vld [vmem:[#allocation2 + $0x10] sm:$0xff]  ;;  %v770_v15 = vadd.f32 %v527_v9, %v88_v0  ;;  %v802_v16 = vadd.f32 %v655_v10, %v120_v1  ;;  %v1593_v17 = vpop.f32.mrb[6].mxu0  ;;  %v1625_v18 = vpop.f32.mrb[6].mxu1 }
  0xe7   :  { %v932_v14 = vld [vmem:[#allocation2 + $0x110] sm:$0xff]  ;;  %v971_v19 = vadd.f32 %v1987_v2, %v900_v13  ;;  %v898_v21 = vld [vmem:[#allocation2] sm:$0xff]  ;;  %837 = vst.msk [vmem:[#allocation2 + $0x30] sm:$0xff] %vm19_vm3, %v772_v7  ;;  %869 = vst.msk [vmem:[#allocation2 + $0x130] sm:$0xff] %vm19_vm3, %v804_v8  ;;  %v773_v23 = vadd.f32 %v1593_v17, %v91_v5  ;;  %v805_v24 = vadd.f32 %v1625_v18, %v123_v6  ;;  %v530_v25 = vpop.f32.mrb[7].mxu0  ;;  %v658_v26 = vpop.f32.mrb[7].mxu1 }
  0xe8   :  { %v1003_v20 = vadd.f32 %v1987_v2, %v932_v14  ;;  %v930_v22 = vld [vmem:[#allocation2 + $0x100] sm:$0xff]  ;;  %v969_v27 = vadd.f32 %v1987_v2, %v898_v21  ;;  %v901_v29 = vld [vmem:[#allocation2 + $0x18] sm:$0xff]  ;;  %835 = vst.msk [vmem:[#allocation2 + $0x20] sm:$0xff] %vm19_vm3, %v770_v15  ;;  %867 = vst.msk [vmem:[#allocation2 + $0x120] sm:$0xff] %vm19_vm3, %v802_v16  ;;  %v771_v31 = vadd.f32 %v530_v25, %v89_v11 }
  0xe9   :  { %v1001_v28 = vadd.f32 %v1987_v2, %v930_v22  ;;  %v933_v30 = vld [vmem:[#allocation2 + $0x118] sm:$0xff]  ;;  %v803_v32 = vadd.f32 %v658_v26, %v121_v12  ;;  %v1489_v33 = vpack.c.bf16 %v971_v19, %v971_v19  ;;  %v972_v35 = vadd.f32 %v1987_v2, %v901_v29  ;;  %v899_v37 = vld [vmem:[#allocation2 + $0x8] sm:$0xff]  ;;  %838 = vst.msk [vmem:[#allocation2 + $0x38] sm:$0xff] %vm19_vm3, %v773_v23  ;;  %v130_v29 = vld [vmem:[#allocation2 + $0x170] sm:$0xff] }
  0xea   :  { %v1521_v34 = vpack.c.bf16 %v1003_v20, %v1003_v20  ;;  %v1004_v36 = vadd.f32 %v1987_v2, %v933_v30  ;;  %v931_v38 = vld [vmem:[#allocation2 + $0x108] sm:$0xff]  ;;  %870 = vst.msk [vmem:[#allocation2 + $0x138] sm:$0xff] %vm19_vm3, %v805_v24  ;;  %v1487_v39 = vpack.c.bf16 %v969_v27, %v969_v27  ;;  %v970_v41 = vadd.f32 %v1987_v2, %v899_v37 }
  0xeb   :  { %v1519_v40 = vpack.c.bf16 %v1001_v28, %v1001_v28  ;;  %v1002_v42 = vadd.f32 %v1987_v2, %v931_v38  ;;  %836 = vst.msk [vmem:[#allocation2 + $0x28] sm:$0xff] %vm19_vm3, %v771_v31  ;;  %868 = vst.msk [vmem:[#allocation2 + $0x128] sm:$0xff] %vm19_vm3, %v803_v32  ;;  %v1490_v45 = vpack.c.bf16 %v972_v35, %v972_v35  ;;  %v98_v28 = vld [vmem:[#allocation2 + $0x70] sm:$0xff]  ;;  %v96_v32 = vld [vmem:[#allocation2 + $0x60] sm:$0xff] }
  0xec   :  { %1292 = vst.msk [vmem:[%s2368_s3 + $0x8] sm:$0xf] %vm1289_vm4, %v1489_v33  ;;  %1324 = vst.msk [vmem:[%s2368_s3 + $0x88] sm:$0xf] %vm1289_vm4, %v1521_v34  ;;  %v1522_v46 = vpack.c.bf16 %v1004_v36, %v1004_v36  ;;  %v1488_v49 = vpack.c.bf16 %v970_v41, %v970_v41  ;;  %v1596_v51 = vpop.f32.mrb[8].mxu0  ;;  %v1628_v52 = vpop.f32.mrb[8].mxu1 }
  0xed   :  { %1290 = vst.msk [vmem:[%s2368_s3] sm:$0xf] %vm1289_vm4, %v1487_v39  ;;  %1322 = vst.msk [vmem:[%s2368_s3 + $0x80] sm:$0xf] %vm1289_vm4, %v1519_v40  ;;  %v1520_v50 = vpack.c.bf16 %v1002_v42, %v1002_v42  ;;  %v776_v55 = vadd.f32 %v1596_v51, %v94_v43  ;;  %v808_v56 = vadd.f32 %v1628_v52, %v126_v44  ;;  %v543_v57 = vpop.f32.mrb[9].mxu0  ;;  %v671_v58 = vpop.f32.mrb[9].mxu1 }
  0xee   :  { %1293 = vst.msk [vmem:[%s2368_s3 + $0xc] sm:$0xf] %vm1289_vm4, %v1490_v45  ;;  %1325 = vst.msk [vmem:[%s2368_s3 + $0x8c] sm:$0xf] %vm1289_vm4, %v1522_v46  ;;  %v904_v61 = vld [vmem:[#allocation2 + $0x30] sm:$0xff]  ;;  %v774_v63 = vadd.f32 %v543_v57, %v92_v47  ;;  %v806_v0 = vadd.f32 %v671_v58, %v124_v48  ;;  %v1597_v1 = vpop.f32.mrb[10].mxu0 }
  0xef   :  { %1291 = vst.msk [vmem:[%s2368_s3 + $0x4] sm:$0xf] %vm1289_vm4, %v1488_v49  ;;  %1323 = vst.msk [vmem:[%s2368_s3 + $0x84] sm:$0xf] %vm1289_vm4, %v1520_v50  ;;  %v936_v62 = vld [vmem:[#allocation2 + $0x130] sm:$0xff]  ;;  %v1629_v3 = vpop.f32.mrb[10].mxu1  ;;  %v975_v4 = vadd.f32 %v1987_v2, %v904_v61  ;;  %v777_v8 = vadd.f32 %v1597_v1, %v95_v53 }
  0xf0   :  { %v1007_v5 = vadd.f32 %v1987_v2, %v936_v62  ;;  %v902_v6 = vld [vmem:[#allocation2 + $0x20] sm:$0xff]  ;;  %841 = vst.msk [vmem:[#allocation2 + $0x50] sm:$0xff] %vm19_vm3, %v776_v55  ;;  %873 = vst.msk [vmem:[#allocation2 + $0x150] sm:$0xff] %vm19_vm3, %v808_v56  ;;  %v809_v9 = vadd.f32 %v1629_v3, %v127_v54  ;;  %v546_v10 = vpop.f32.mrb[11].mxu0  ;;  %v674_v11 = vpop.f32.mrb[11].mxu1  ;;  %v905_v14 = vld [vmem:[#allocation2 + $0x38] sm:$0xff] }
  0xf1   :  { %v934_v7 = vld [vmem:[#allocation2 + $0x120] sm:$0xff]  ;;  %v973_v12 = vadd.f32 %v1987_v2, %v902_v6  ;;  %v937_v15 = vld [vmem:[#allocation2 + $0x138] sm:$0xff]  ;;  %839 = vst.msk [vmem:[#allocation2 + $0x40] sm:$0xff] %vm19_vm3, %v774_v63  ;;  %871 = vst.msk [vmem:[#allocation2 + $0x140] sm:$0xff] %vm19_vm3, %v806_v0  ;;  %v775_v16 = vadd.f32 %v546_v10, %v93_v59  ;;  %v807_v17 = vadd.f32 %v674_v11, %v125_v60 }
  0xf2   :  { %v1005_v13 = vadd.f32 %v1987_v2, %v934_v7  ;;  %v1493_v18 = vpack.c.bf16 %v975_v4, %v975_v4  ;;  %v1525_v19 = vpack.c.bf16 %v1007_v5, %v1007_v5  ;;  %v976_v20 = vadd.f32 %v1987_v2, %v905_v14  ;;  %v903_v22 = vld [vmem:[#allocation2 + $0x28] sm:$0xff]  ;;  %842 = vst.msk [vmem:[#allocation2 + $0x58] sm:$0xff] %vm19_vm3, %v777_v8  ;;  %v128_v33 = vld [vmem:[#allocation2 + $0x160] sm:$0xff]  ;;  %v99_v38 = vld [vmem:[#allocation2 + $0x78] sm:$0xff] }
  0xf3   :  { %v1008_v21 = vadd.f32 %v1987_v2, %v937_v15  ;;  %v935_v23 = vld [vmem:[#allocation2 + $0x128] sm:$0xff]  ;;  %874 = vst.msk [vmem:[#allocation2 + $0x158] sm:$0xff] %vm19_vm3, %v809_v9  ;;  %v1491_v24 = vpack.c.bf16 %v973_v12, %v973_v12  ;;  %v974_v26 = vadd.f32 %v1987_v2, %v903_v22  ;;  %840 = vst.msk [vmem:[#allocation2 + $0x48] sm:$0xff] %vm19_vm3, %v775_v16  ;;  %v131_v39 = vld [vmem:[#allocation2 + $0x178] sm:$0xff] }
  0xf4   :  { %v1523_v25 = vpack.c.bf16 %v1005_v13, %v1005_v13  ;;  %v1006_v27 = vadd.f32 %v1987_v2, %v935_v23  ;;  %872 = vst.msk [vmem:[#allocation2 + $0x148] sm:$0xff] %vm19_vm3, %v807_v17  ;;  %v1494_v30 = vpack.c.bf16 %v976_v20, %v976_v20  ;;  %v1600_v36 = vpop.f32.mrb[12].mxu0  ;;  %v1632_v37 = vpop.f32.mrb[12].mxu1  ;;  %v97_v44 = vld [vmem:[#allocation2 + $0x68] sm:$0xff]  ;;  %v102_v13 = vld [vmem:[#allocation2 + $0x90] sm:$0xff]  ;;  %v100_v17 = vld [vmem:[#allocation2 + $0x80] sm:$0xff] }
  0xf5   :  { %1296 = vst.msk [vmem:[%s2368_s3 + $0x18] sm:$0xf] %vm1289_vm4, %v1493_v18  ;;  %1328 = vst.msk [vmem:[%s2368_s3 + $0x98] sm:$0xf] %vm1289_vm4, %v1525_v19  ;;  %v1526_v31 = vpack.c.bf16 %v1008_v21, %v1008_v21  ;;  %v1492_v34 = vpack.c.bf16 %v974_v26, %v974_v26  ;;  %v780_v40 = vadd.f32 %v1600_v36, %v98_v28  ;;  %v559_v42 = vpop.f32.mrb[13].mxu0  ;;  %v687_v43 = vpop.f32.mrb[13].mxu1 }
  0xf6   :  { %1294 = vst.msk [vmem:[%s2368_s3 + $0x10] sm:$0xf] %vm1289_vm4, %v1491_v24  ;;  %1326 = vst.msk [vmem:[%s2368_s3 + $0x90] sm:$0xf] %vm1289_vm4, %v1523_v25  ;;  %v1524_v35 = vpack.c.bf16 %v1006_v27, %v1006_v27  ;;  %v812_v41 = vadd.f32 %v1632_v37, %v130_v29  ;;  %v129_v45 = vld [vmem:[#allocation2 + $0x168] sm:$0xff]  ;;  %v778_v48 = vadd.f32 %v559_v42, %v96_v32  ;;  %v1601_v50 = vpop.f32.mrb[14].mxu0 }
  0xf7   :  { %1297 = vst.msk [vmem:[%s2368_s3 + $0x1c] sm:$0xf] %vm1289_vm4, %v1494_v30  ;;  %1329 = vst.msk [vmem:[%s2368_s3 + $0x9c] sm:$0xf] %vm1289_vm4, %v1526_v31  ;;  %v908_v46 = vld [vmem:[#allocation2 + $0x50] sm:$0xff]  ;;  %v810_v49 = vadd.f32 %v687_v43, %v128_v33  ;;  %v1633_v51 = vpop.f32.mrb[14].mxu1  ;;  %v781_v56 = vadd.f32 %v1601_v50, %v99_v38 }
  0xf8   :  { %1295 = vst.msk [vmem:[%s2368_s3 + $0x14] sm:$0xf] %vm1289_vm4, %v1492_v34  ;;  %1327 = vst.msk [vmem:[%s2368_s3 + $0x94] sm:$0xf] %vm1289_vm4, %v1524_v35  ;;  %v940_v47 = vld [vmem:[#allocation2 + $0x150] sm:$0xff]  ;;  %v979_v52 = vadd.f32 %v1987_v2, %v908_v46  ;;  %v906_v54 = vld [vmem:[#allocation2 + $0x40] sm:$0xff]  ;;  %v813_v57 = vadd.f32 %v1633_v51, %v131_v39 }
  0xf9   :  { %v1011_v53 = vadd.f32 %v1987_v2, %v940_v47  ;;  %v938_v55 = vld [vmem:[#allocation2 + $0x140] sm:$0xff]  ;;  %845 = vst.msk [vmem:[#allocation2 + $0x70] sm:$0xff] %vm19_vm3, %v780_v40  ;;  %877 = vst.msk [vmem:[#allocation2 + $0x170] sm:$0xff] %vm19_vm3, %v812_v41  ;;  %v562_v58 = vpop.f32.mrb[15].mxu0  ;;  %v690_v59 = vpop.f32.mrb[15].mxu1  ;;  %v977_v60 = vadd.f32 %v1987_v2, %v906_v54  ;;  %v909_v62 = vld [vmem:[#allocation2 + $0x58] sm:$0xff] }
  0xfa   :  { %v1009_v61 = vadd.f32 %v1987_v2, %v938_v55  ;;  %v941_v63 = vld [vmem:[#allocation2 + $0x158] sm:$0xff]  ;;  %843 = vst.msk [vmem:[#allocation2 + $0x60] sm:$0xff] %vm19_vm3, %v778_v48  ;;  %875 = vst.msk [vmem:[#allocation2 + $0x160] sm:$0xff] %vm19_vm3, %v810_v49  ;;  %v779_v0 = vadd.f32 %v562_v58, %v97_v44  ;;  %v811_v1 = vadd.f32 %v690_v59, %v129_v45  ;;  %v907_v7 = vld [vmem:[#allocation2 + $0x48] sm:$0xff] }
  0xfb   :  { %v1497_v3 = vpack.c.bf16 %v979_v52, %v979_v52  ;;  %v1529_v4 = vpack.c.bf16 %v1011_v53, %v1011_v53  ;;  %v980_v5 = vadd.f32 %v1987_v2, %v909_v62  ;;  %v1012_v6 = vadd.f32 %v1987_v2, %v941_v63  ;;  %v939_v8 = vld [vmem:[#allocation2 + $0x148] sm:$0xff]  ;;  %846 = vst.msk [vmem:[#allocation2 + $0x78] sm:$0xff] %vm19_vm3, %v781_v56  ;;  %v134_v14 = vld [vmem:[#allocation2 + $0x190] sm:$0xff]  ;;  %v132_v18 = vld [vmem:[#allocation2 + $0x180] sm:$0xff] }
  0xfc   :  { %878 = vst.msk [vmem:[#allocation2 + $0x178] sm:$0xff] %vm19_vm3, %v813_v57  ;;  %v1495_v9 = vpack.c.bf16 %v977_v60, %v977_v60  ;;  %v1527_v10 = vpack.c.bf16 %v1009_v61, %v1009_v61  ;;  %v978_v11 = vadd.f32 %v1987_v2, %v907_v7  ;;  %v1010_v12 = vadd.f32 %v1987_v2, %v939_v8  ;;  %v1604_v21 = vpop.f32.mrb[16].mxu0  ;;  %v1636_v22 = vpop.f32.mrb[16].mxu1  ;;  %v103_v23 = vld [vmem:[#allocation2 + $0x98] sm:$0xff]  ;;  %v101_v29 = vld [vmem:[#allocation2 + $0x88] sm:$0xff]  ;;  %v106_v61 = vld [vmem:[#allocation2 + $0xb0] sm:$0xff] }
  0xfd   :  { %844 = vst.msk [vmem:[#allocation2 + $0x68] sm:$0xff] %vm19_vm3, %v779_v0  ;;  %876 = vst.msk [vmem:[#allocation2 + $0x168] sm:$0xff] %vm19_vm3, %v811_v1  ;;  %v1498_v15 = vpack.c.bf16 %v980_v5, %v980_v5  ;;  %v1530_v16 = vpack.c.bf16 %v1012_v6, %v1012_v6  ;;  %v135_v24 = vld [vmem:[#allocation2 + $0x198] sm:$0xff]  ;;  %v784_v25 = vadd.f32 %v1604_v21, %v102_v13  ;;  %v575_v27 = vpop.f32.mrb[17].mxu0  ;;  %v703_v28 = vpop.f32.mrb[17].mxu1  ;;  %v133_v30 = vld [vmem:[#allocation2 + $0x188] sm:$0xff] }
  0xfe   :  { %1300 = vst.msk [vmem:[%s2368_s3 + $0x28] sm:$0xf] %vm1289_vm4, %v1497_v3  ;;  %1332 = vst.msk [vmem:[%s2368_s3 + $0xa8] sm:$0xf] %vm1289_vm4, %v1529_v4  ;;  %v1496_v19 = vpack.c.bf16 %v978_v11, %v978_v11  ;;  %v1528_v20 = vpack.c.bf16 %v1010_v12, %v1010_v12  ;;  %v816_v26 = vadd.f32 %v1636_v22, %v134_v14  ;;  %v1605_v35 = vpop.f32.mrb[18].mxu0  ;;  %v1637_v36 = vpop.f32.mrb[18].mxu1 }
  0xff   :  { %1298 = vst.msk [vmem:[%s2368_s3 + $0x20] sm:$0xf] %vm1289_vm4, %v1495_v9  ;;  %1330 = vst.msk [vmem:[%s2368_s3 + $0xa0] sm:$0xf] %vm1289_vm4, %v1527_v10  ;;  %v782_v33 = vadd.f32 %v575_v27, %v100_v17  ;;  %v814_v34 = vadd.f32 %v703_v28, %v132_v18  ;;  %v785_v41 = vadd.f32 %v1605_v35, %v103_v23  ;;  %v578_v43 = vpop.f32.mrb[19].mxu0  ;;  %v706_v44 = vpop.f32.mrb[19].mxu1 }
 0x100   :  { %1301 = vst.msk [vmem:[%s2368_s3 + $0x2c] sm:$0xf] %vm1289_vm4, %v1498_v15  ;;  %1333 = vst.msk [vmem:[%s2368_s3 + $0xac] sm:$0xf] %vm1289_vm4, %v1530_v16  ;;  %v912_v31 = vld [vmem:[#allocation2 + $0x70] sm:$0xff]  ;;  %v817_v42 = vadd.f32 %v1637_v36, %v135_v24  ;;  %v783_v49 = vadd.f32 %v578_v43, %v101_v29  ;;  %v815_v50 = vadd.f32 %v706_v44, %v133_v30  ;;  %v104_v1 = vld [vmem:[#allocation2 + $0xa0] sm:$0xff] }
 0x101   :  { %1299 = vst.msk [vmem:[%s2368_s3 + $0x24] sm:$0xf] %vm1289_vm4, %v1496_v19  ;;  %1331 = vst.msk [vmem:[%s2368_s3 + $0xa4] sm:$0xf] %vm1289_vm4, %v1528_v20  ;;  %v944_v32 = vld [vmem:[#allocation2 + $0x170] sm:$0xff]  ;;  %v983_v37 = vadd.f32 %v1987_v2, %v912_v31  ;;  %v910_v39 = vld [vmem:[#allocation2 + $0x60] sm:$0xff] }
 0x102   :  { %v1015_v38 = vadd.f32 %v1987_v2, %v944_v32  ;;  %v942_v40 = vld [vmem:[#allocation2 + $0x160] sm:$0xff]  ;;  %849 = vst.msk [vmem:[#allocation2 + $0x90] sm:$0xff] %vm19_vm3, %v784_v25  ;;  %881 = vst.msk [vmem:[#allocation2 + $0x190] sm:$0xff] %vm19_vm3, %v816_v26  ;;  %v981_v45 = vadd.f32 %v1987_v2, %v910_v39  ;;  %v913_v47 = vld [vmem:[#allocation2 + $0x78] sm:$0xff] }
 0x103   :  { %v1013_v46 = vadd.f32 %v1987_v2, %v942_v40  ;;  %v945_v48 = vld [vmem:[#allocation2 + $0x178] sm:$0xff]  ;;  %847 = vst.msk [vmem:[#allocation2 + $0x80] sm:$0xff] %vm19_vm3, %v782_v33  ;;  %879 = vst.msk [vmem:[#allocation2 + $0x180] sm:$0xff] %vm19_vm3, %v814_v34  ;;  %v1501_v51 = vpack.c.bf16 %v983_v37, %v983_v37  ;;  %v984_v53 = vadd.f32 %v1987_v2, %v913_v47  ;;  %v138_v62 = vld [vmem:[#allocation2 + $0x1b0] sm:$0xff] }
 0x104   :  { %v1533_v52 = vpack.c.bf16 %v1015_v38, %v1015_v38  ;;  %v1016_v54 = vadd.f32 %v1987_v2, %v945_v48  ;;  %v911_v55 = vld [vmem:[#allocation2 + $0x68] sm:$0xff]  ;;  %850 = vst.msk [vmem:[#allocation2 + $0x98] sm:$0xff] %vm19_vm3, %v785_v41  ;;  %882 = vst.msk [vmem:[#allocation2 + $0x198] sm:$0xff] %vm19_vm3, %v817_v42  ;;  %v1499_v57 = vpack.c.bf16 %v981_v45, %v981_v45  ;;  %v136_v3 = vld [vmem:[#allocation2 + $0x1a0] sm:$0xff]  ;;  %v1608_v6 = vpop.f32.mrb[20].mxu0  ;;  %v1640_v7 = vpop.f32.mrb[20].mxu1 }
 0x105   :  { %v943_v56 = vld [vmem:[#allocation2 + $0x168] sm:$0xff]  ;;  %v1531_v58 = vpack.c.bf16 %v1013_v46, %v1013_v46  ;;  %v982_v59 = vadd.f32 %v1987_v2, %v911_v55  ;;  %848 = vst.msk [vmem:[#allocation2 + $0x88] sm:$0xff] %vm19_vm3, %v783_v49  ;;  %880 = vst.msk [vmem:[#allocation2 + $0x188] sm:$0xff] %vm19_vm3, %v815_v50  ;;  %v1502_v63 = vpack.c.bf16 %v984_v53, %v984_v53  ;;  %v107_v8 = vld [vmem:[#allocation2 + $0xb8] sm:$0xff]  ;;  %v591_v12 = vpop.f32.mrb[21].mxu0  ;;  %v719_v13 = vpop.f32.mrb[21].mxu1 }
 0x106   :  { %v1014_v60 = vadd.f32 %v1987_v2, %v943_v56  ;;  %1304 = vst.msk [vmem:[%s2368_s3 + $0x38] sm:$0xf] %vm1289_vm4, %v1501_v51  ;;  %1336 = vst.msk [vmem:[%s2368_s3 + $0xb8] sm:$0xf] %vm1289_vm4, %v1533_v52  ;;  %v1534_v0 = vpack.c.bf16 %v1016_v54, %v1016_v54  ;;  %v139_v9 = vld [vmem:[#allocation2 + $0x1b8] sm:$0xff]  ;;  %v788_v10 = vadd.f32 %v1608_v6, %v106_v61  ;;  %v105_v14 = vld [vmem:[#allocation2 + $0xa8] sm:$0xff] }
 0x107   :  { %1302 = vst.msk [vmem:[%s2368_s3 + $0x30] sm:$0xf] %vm1289_vm4, %v1499_v57  ;;  %1334 = vst.msk [vmem:[%s2368_s3 + $0xb0] sm:$0xf] %vm1289_vm4, %v1531_v58  ;;  %v1500_v4 = vpack.c.bf16 %v982_v59, %v982_v59  ;;  %v820_v11 = vadd.f32 %v1640_v7, %v138_v62  ;;  %v137_v15 = vld [vmem:[#allocation2 + $0x1a8] sm:$0xff]  ;;  %v786_v18 = vadd.f32 %v591_v12, %v104_v1  ;;  %v1609_v20 = vpop.f32.mrb[22].mxu0 }
 0x108   :  { %v1532_v5 = vpack.c.bf16 %v1014_v60, %v1014_v60  ;;  %1305 = vst.msk [vmem:[%s2368_s3 + $0x3c] sm:$0xf] %vm1289_vm4, %v1502_v63  ;;  %1337 = vst.msk [vmem:[%s2368_s3 + $0xbc] sm:$0xf] %vm1289_vm4, %v1534_v0  ;;  %v818_v19 = vadd.f32 %v719_v13, %v136_v3  ;;  %v1641_v21 = vpop.f32.mrb[22].mxu1  ;;  %v789_v26 = vadd.f32 %v1609_v20, %v107_v8  ;;  %v594_v28 = vpop.f32.mrb[23].mxu0 }
 0x109   :  { %1303 = vst.msk [vmem:[%s2368_s3 + $0x34] sm:$0xf] %vm1289_vm4, %v1500_v4  ;;  %v916_v16 = vld [vmem:[#allocation2 + $0x90] sm:$0xff]  ;;  %v821_v27 = vadd.f32 %v1641_v21, %v139_v9  ;;  %v722_v29 = vpop.f32.mrb[23].mxu1  ;;  %v787_v34 = vadd.f32 %v594_v28, %v105_v14  ;;  %v108_v50 = vld [vmem:[#allocation2 + $0xc0] sm:$0xff]  ;;  %v111_v56 = vld [vmem:[#allocation2 + $0xd8] sm:$0xff] }
 0x10a   :  { %1335 = vst.msk [vmem:[%s2368_s3 + $0xb4] sm:$0xf] %vm1289_vm4, %v1532_v5  ;;  %v948_v17 = vld [vmem:[#allocation2 + $0x190] sm:$0xff]  ;;  %v987_v22 = vadd.f32 %v1987_v2, %v916_v16  ;;  %v914_v24 = vld [vmem:[#allocation2 + $0x80] sm:$0xff]  ;;  %v819_v35 = vadd.f32 %v722_v29, %v137_v15  ;;  %v143_v57 = vld [vmem:[#allocation2 + $0x1d8] sm:$0xff] }
 0x10b   :  { %v1019_v23 = vadd.f32 %v1987_v2, %v948_v17  ;;  %v946_v25 = vld [vmem:[#allocation2 + $0x180] sm:$0xff]  ;;  %853 = vst.msk [vmem:[#allocation2 + $0xb0] sm:$0xff] %vm19_vm3, %v788_v10  ;;  %885 = vst.msk [vmem:[#allocation2 + $0x1b0] sm:$0xff] %vm19_vm3, %v820_v11  ;;  %v985_v30 = vadd.f32 %v1987_v2, %v914_v24  ;;  %v917_v32 = vld [vmem:[#allocation2 + $0x98] sm:$0xff] }
 0x10c   :  { %v1017_v31 = vadd.f32 %v1987_v2, %v946_v25  ;;  %v949_v33 = vld [vmem:[#allocation2 + $0x198] sm:$0xff]  ;;  %851 = vst.msk [vmem:[#allocation2 + $0xa0] sm:$0xff] %vm19_vm3, %v786_v18  ;;  %883 = vst.msk [vmem:[#allocation2 + $0x1a0] sm:$0xff] %vm19_vm3, %v818_v19  ;;  %v1505_v36 = vpack.c.bf16 %v987_v22, %v987_v22  ;;  %v988_v38 = vadd.f32 %v1987_v2, %v917_v32  ;;  %v915_v40 = vld [vmem:[#allocation2 + $0x88] sm:$0xff]  ;;  %v1612_v54 = vpop.f32.mrb[24].mxu0  ;;  %v1644_v55 = vpop.f32.mrb[24].mxu1 }
 0x10d   :  { %v1537_v37 = vpack.c.bf16 %v1019_v23, %v1019_v23  ;;  %v1020_v39 = vadd.f32 %v1987_v2, %v949_v33  ;;  %v947_v41 = vld [vmem:[#allocation2 + $0x188] sm:$0xff]  ;;  %854 = vst.msk [vmem:[#allocation2 + $0xb8] sm:$0xff] %vm19_vm3, %v789_v26  ;;  %886 = vst.msk [vmem:[#allocation2 + $0x1b8] sm:$0xff] %vm19_vm3, %v821_v27  ;;  %v1503_v42 = vpack.c.bf16 %v985_v30, %v985_v30  ;;  %v110_v46 = vld [vmem:[#allocation2 + $0xd0] sm:$0xff]  ;;  %v607_v60 = vpop.f32.mrb[25].mxu0  ;;  %v735_v61 = vpop.f32.mrb[25].mxu1 }
 0x10e   :  { %v1535_v43 = vpack.c.bf16 %v1017_v31, %v1017_v31  ;;  %v986_v44 = vadd.f32 %v1987_v2, %v915_v40  ;;  %v1018_v45 = vadd.f32 %v1987_v2, %v947_v41  ;;  %852 = vst.msk [vmem:[#allocation2 + $0xa8] sm:$0xff] %vm19_vm3, %v787_v34  ;;  %884 = vst.msk [vmem:[#allocation2 + $0x1a8] sm:$0xff] %vm19_vm3, %v819_v35  ;;  %v142_v47 = vld [vmem:[#allocation2 + $0x1d0] sm:$0xff]  ;;  %v140_v51 = vld [vmem:[#allocation2 + $0x1c0] sm:$0xff]  ;;  %v1613_v5 = vpop.f32.mrb[26].mxu0  ;;  %v1645_v6 = vpop.f32.mrb[26].mxu1 }
 0x10f   :  { %1308 = vst.msk [vmem:[%s2368_s3 + $0x48] sm:$0xf] %vm1289_vm4, %v1505_v36  ;;  %1340 = vst.msk [vmem:[%s2368_s3 + $0xc8] sm:$0xf] %vm1289_vm4, %v1537_v37  ;;  %v1506_v48 = vpack.c.bf16 %v988_v38, %v988_v38  ;;  %v1538_v49 = vpack.c.bf16 %v1020_v39, %v1020_v39  ;;  %v792_v58 = vadd.f32 %v1612_v54, %v110_v46  ;;  %v109_v62 = vld [vmem:[#allocation2 + $0xc8] sm:$0xff]  ;;  %v610_v13 = vpop.f32.mrb[27].mxu0 }
 0x110   :  { %1306 = vst.msk [vmem:[%s2368_s3 + $0x40] sm:$0xf] %vm1289_vm4, %v1503_v42  ;;  %1338 = vst.msk [vmem:[%s2368_s3 + $0xc0] sm:$0xf] %vm1289_vm4, %v1535_v43  ;;  %v1504_v52 = vpack.c.bf16 %v986_v44, %v986_v44  ;;  %v1536_v53 = vpack.c.bf16 %v1018_v45, %v1018_v45  ;;  %v824_v59 = vadd.f32 %v1644_v55, %v142_v47  ;;  %v141_v63 = vld [vmem:[#allocation2 + $0x1c8] sm:$0xff]  ;;  %v738_v14 = vpop.f32.mrb[27].mxu1 }
 0x111   :  { %1309 = vst.msk [vmem:[%s2368_s3 + $0x4c] sm:$0xf] %vm1289_vm4, %v1506_v48  ;;  %1341 = vst.msk [vmem:[%s2368_s3 + $0xcc] sm:$0xf] %vm1289_vm4, %v1538_v49  ;;  %v790_v3 = vadd.f32 %v607_v60, %v108_v50  ;;  %v822_v4 = vadd.f32 %v735_v61, %v140_v51  ;;  %v793_v11 = vadd.f32 %v1613_v5, %v111_v56  ;;  %v114_v31 = vld [vmem:[#allocation2 + $0xf0] sm:$0xff]  ;;  %v112_v35 = vld [vmem:[#allocation2 + $0xe0] sm:$0xff] }
 0x112   :  { %1307 = vst.msk [vmem:[%s2368_s3 + $0x44] sm:$0xf] %vm1289_vm4, %v1504_v52  ;;  %1339 = vst.msk [vmem:[%s2368_s3 + $0xc4] sm:$0xf] %vm1289_vm4, %v1536_v53  ;;  %v920_v0 = vld [vmem:[#allocation2 + $0xb0] sm:$0xff]  ;;  %v825_v12 = vadd.f32 %v1645_v6, %v143_v57  ;;  %v791_v19 = vadd.f32 %v610_v13, %v109_v62  ;;  %v823_v20 = vadd.f32 %v738_v14, %v141_v63  ;;  %v144_v36 = vld [vmem:[#allocation2 + $0x1e0] sm:$0xff] }
 0x113   :  { %v952_v1 = vld [vmem:[#allocation2 + $0x1b0] sm:$0xff]  ;;  %v991_v7 = vadd.f32 %v1987_v2, %v920_v0  ;;  %v918_v9 = vld [vmem:[#allocation2 + $0xa0] sm:$0xff]  ;;  %857 = vst.msk [vmem:[#allocation2 + $0xd0] sm:$0xff] %vm19_vm3, %v792_v58  ;;  %889 = vst.msk [vmem:[#allocation2 + $0x1d0] sm:$0xff] %vm19_vm3, %v824_v59 }
 0x114   :  { %v1023_v8 = vadd.f32 %v1987_v2, %v952_v1  ;;  %v950_v10 = vld [vmem:[#allocation2 + $0x1a0] sm:$0xff]  ;;  %v989_v15 = vadd.f32 %v1987_v2, %v918_v9  ;;  %v921_v17 = vld [vmem:[#allocation2 + $0xb8] sm:$0xff]  ;;  %855 = vst.msk [vmem:[#allocation2 + $0xc0] sm:$0xff] %vm19_vm3, %v790_v3  ;;  %887 = vst.msk [vmem:[#allocation2 + $0x1c0] sm:$0xff] %vm19_vm3, %v822_v4  ;;  %v1616_v39 = vpop.f32.mrb[28].mxu0  ;;  %v1648_v40 = vpop.f32.mrb[28].mxu1 }
 0x115   :  { %v1021_v16 = vadd.f32 %v1987_v2, %v950_v10  ;;  %v953_v18 = vld [vmem:[#allocation2 + $0x1b8] sm:$0xff]  ;;  %v1509_v21 = vpack.c.bf16 %v991_v7, %v991_v7  ;;  %v992_v23 = vadd.f32 %v1987_v2, %v921_v17  ;;  %v919_v25 = vld [vmem:[#allocation2 + $0xa8] sm:$0xff]  ;;  %858 = vst.msk [vmem:[#allocation2 + $0xd8] sm:$0xff] %vm19_vm3, %v793_v11  ;;  %890 = vst.msk [vmem:[#allocation2 + $0x1d8] sm:$0xff] %vm19_vm3, %v825_v12  ;;  %v623_v45 = vpop.f32.mrb[29].mxu0  ;;  %v751_v46 = vpop.f32.mrb[29].mxu1 }
 0x116   :  { %v1541_v22 = vpack.c.bf16 %v1023_v8, %v1023_v8  ;;  %v1024_v24 = vadd.f32 %v1987_v2, %v953_v18  ;;  %v951_v26 = vld [vmem:[#allocation2 + $0x1a8] sm:$0xff]  ;;  %v1507_v27 = vpack.c.bf16 %v989_v15, %v989_v15  ;;  %v990_v29 = vadd.f32 %v1987_v2, %v919_v25  ;;  %856 = vst.msk [vmem:[#allocation2 + $0xc8] sm:$0xff] %vm19_vm3, %v791_v19  ;;  %v146_v32 = vld [vmem:[#allocation2 + $0x1f0] sm:$0xff]  ;;  %v115_v41 = vld [vmem:[#allocation2 + $0xf8] sm:$0xff]  ;;  %v1617_v53 = vpop.f32.mrb[30].mxu0  ;;  %v1649_v54 = vpop.f32.mrb[30].mxu1 }
 0x117   :  { %v1539_v28 = vpack.c.bf16 %v1021_v16, %v1021_v16  ;;  %v1022_v30 = vadd.f32 %v1987_v2, %v951_v26  ;;  %888 = vst.msk [vmem:[#allocation2 + $0x1c8] sm:$0xff] %vm19_vm3, %v823_v20  ;;  %v1510_v33 = vpack.c.bf16 %v992_v23, %v992_v23  ;;  %v147_v42 = vld [vmem:[#allocation2 + $0x1f8] sm:$0xff]  ;;  %v796_v43 = vadd.f32 %v1616_v39, %v114_v31  ;;  %v113_v47 = vld [vmem:[#allocation2 + $0xe8] sm:$0xff]  ;;  %v626_v61 = vpop.f32.mrb[31].mxu0  ;;  %v754_v62 = vpop.f32.mrb[31].mxu1 }
 0x118   :  { %1312 = vst.msk [vmem:[%s2368_s3 + $0x58] sm:$0xf] %vm1289_vm4, %v1509_v21  ;;  %1344 = vst.msk [vmem:[%s2368_s3 + $0xd8] sm:$0xf] %vm1289_vm4, %v1541_v22  ;;  %v1542_v34 = vpack.c.bf16 %v1024_v24, %v1024_v24  ;;  %v1508_v37 = vpack.c.bf16 %v990_v29, %v990_v29  ;;  %v828_v44 = vadd.f32 %v1648_v40, %v146_v32  ;;  %v145_v48 = vld [vmem:[#allocation2 + $0x1e8] sm:$0xff] }
 0x119   :  { %1310 = vst.msk [vmem:[%s2368_s3 + $0x50] sm:$0xf] %vm1289_vm4, %v1507_v27  ;;  %1342 = vst.msk [vmem:[%s2368_s3 + $0xd0] sm:$0xf] %vm1289_vm4, %v1539_v28  ;;  %v1540_v38 = vpack.c.bf16 %v1022_v30, %v1022_v30  ;;  %v794_v51 = vadd.f32 %v623_v45, %v112_v35  ;;  %v826_v52 = vadd.f32 %v751_v46, %v144_v36 }
 0x11a   :  { %1313 = vst.msk [vmem:[%s2368_s3 + $0x5c] sm:$0xf] %vm1289_vm4, %v1510_v33  ;;  %1345 = vst.msk [vmem:[%s2368_s3 + $0xdc] sm:$0xf] %vm1289_vm4, %v1542_v34  ;;  %v924_v49 = vld [vmem:[#allocation2 + $0xd0] sm:$0xff]  ;;  %v797_v59 = vadd.f32 %v1617_v53, %v115_v41  ;;  %v829_v60 = vadd.f32 %v1649_v54, %v147_v42  ;;  %v795_v4 = vadd.f32 %v626_v61, %v113_v47 }
 0x11b   :  { %1311 = vst.msk [vmem:[%s2368_s3 + $0x54] sm:$0xf] %vm1289_vm4, %v1508_v37  ;;  %1343 = vst.msk [vmem:[%s2368_s3 + $0xd4] sm:$0xf] %vm1289_vm4, %v1540_v38  ;;  %v956_v50 = vld [vmem:[#allocation2 + $0x1d0] sm:$0xff]  ;;  %v995_v55 = vadd.f32 %v1987_v2, %v924_v49  ;;  %v922_v57 = vld [vmem:[#allocation2 + $0xc0] sm:$0xff]  ;;  %v827_v5 = vadd.f32 %v754_v62, %v145_v48 }
 0x11c   :  { %v1027_v56 = vadd.f32 %v1987_v2, %v956_v50  ;;  %v954_v58 = vld [vmem:[#allocation2 + $0x1c0] sm:$0xff]  ;;  %861 = vst.msk [vmem:[#allocation2 + $0xf0] sm:$0xff] %vm19_vm3, %v796_v43  ;;  %893 = vst.msk [vmem:[#allocation2 + $0x1f0] sm:$0xff] %vm19_vm3, %v828_v44  ;;  %v993_v63 = vadd.f32 %v1987_v2, %v922_v57  ;;  %v925_v1 = vld [vmem:[#allocation2 + $0xd8] sm:$0xff] }
 0x11d   :  { %v1025_v0 = vadd.f32 %v1987_v2, %v954_v58  ;;  %v957_v3 = vld [vmem:[#allocation2 + $0x1d8] sm:$0xff]  ;;  %859 = vst.msk [vmem:[#allocation2 + $0xe0] sm:$0xff] %vm19_vm3, %v794_v51  ;;  %891 = vst.msk [vmem:[#allocation2 + $0x1e0] sm:$0xff] %vm19_vm3, %v826_v52  ;;  %v1513_v6 = vpack.c.bf16 %v995_v55, %v995_v55  ;;  %v996_v8 = vadd.f32 %v1987_v2, %v925_v1  ;;  %v923_v10 = vld [vmem:[#allocation2 + $0xc8] sm:$0xff] }
 0x11e   :  { %v1545_v7 = vpack.c.bf16 %v1027_v56, %v1027_v56  ;;  %v1028_v9 = vadd.f32 %v1987_v2, %v957_v3  ;;  %v955_v11 = vld [vmem:[#allocation2 + $0x1c8] sm:$0xff]  ;;  %862 = vst.msk [vmem:[#allocation2 + $0xf8] sm:$0xff] %vm19_vm3, %v797_v59  ;;  %894 = vst.msk [vmem:[#allocation2 + $0x1f8] sm:$0xff] %vm19_vm3, %v829_v60  ;;  %v1511_v12 = vpack.c.bf16 %v993_v63, %v993_v63 }
 0x11f   :  { %v1543_v13 = vpack.c.bf16 %v1025_v0, %v1025_v0  ;;  %v994_v14 = vadd.f32 %v1987_v2, %v923_v10  ;;  %v1026_v15 = vadd.f32 %v1987_v2, %v955_v11  ;;  %860 = vst.msk [vmem:[#allocation2 + $0xe8] sm:$0xff] %vm19_vm3, %v795_v4  ;;  %892 = vst.msk [vmem:[#allocation2 + $0x1e8] sm:$0xff] %vm19_vm3, %v827_v5 }
 0x120   :  { %1316 = vst.msk [vmem:[%s2368_s3 + $0x68] sm:$0xf] %vm1289_vm4, %v1513_v6  ;;  %1348 = vst.msk [vmem:[%s2368_s3 + $0xe8] sm:$0xf] %vm1289_vm4, %v1545_v7  ;;  %v1514_v16 = vpack.c.bf16 %v996_v8, %v996_v8  ;;  %v1546_v17 = vpack.c.bf16 %v1028_v9, %v1028_v9 }
 0x121   :  { %1314 = vst.msk [vmem:[%s2368_s3 + $0x60] sm:$0xf] %vm1289_vm4, %v1511_v12  ;;  %1346 = vst.msk [vmem:[%s2368_s3 + $0xe0] sm:$0xf] %vm1289_vm4, %v1543_v13  ;;  %v1512_v18 = vpack.c.bf16 %v994_v14, %v994_v14  ;;  %v1544_v19 = vpack.c.bf16 %v1026_v15, %v1026_v15 }
 0x122   :  { %1317 = vst.msk [vmem:[%s2368_s3 + $0x6c] sm:$0xf] %vm1289_vm4, %v1514_v16  ;;  %1349 = vst.msk [vmem:[%s2368_s3 + $0xec] sm:$0xf] %vm1289_vm4, %v1546_v17 }
 0x123   :  { %1315 = vst.msk [vmem:[%s2368_s3 + $0x64] sm:$0xf] %vm1289_vm4, %v1512_v18  ;;  %1347 = vst.msk [vmem:[%s2368_s3 + $0xe4] sm:$0xf] %vm1289_vm4, %v1544_v19  ;;  %v928_v20 = vld [vmem:[#allocation2 + $0xf0] sm:$0xff] }
 0x124   :  { %v960_v21 = vld [vmem:[#allocation2 + $0x1f0] sm:$0xff]  ;;  %v999_v22 = vadd.f32 %v1987_v2, %v928_v20  ;;  %v926_v24 = vld [vmem:[#allocation2 + $0xe0] sm:$0xff] }
 0x125   :  { %v1031_v23 = vadd.f32 %v1987_v2, %v960_v21  ;;  %v958_v25 = vld [vmem:[#allocation2 + $0x1e0] sm:$0xff]  ;;  %v997_v26 = vadd.f32 %v1987_v2, %v926_v24  ;;  %v929_v28 = vld [vmem:[#allocation2 + $0xf8] sm:$0xff] }
 0x126   :  { %v1029_v27 = vadd.f32 %v1987_v2, %v958_v25  ;;  %v961_v29 = vld [vmem:[#allocation2 + $0x1f8] sm:$0xff]  ;;  %v1517_v30 = vpack.c.bf16 %v999_v22, %v999_v22  ;;  %v1000_v32 = vadd.f32 %v1987_v2, %v929_v28  ;;  %v927_v34 = vld [vmem:[#allocation2 + $0xe8] sm:$0xff] }
 0x127   :  { %v1549_v31 = vpack.c.bf16 %v1031_v23, %v1031_v23  ;;  %v1032_v33 = vadd.f32 %v1987_v2, %v961_v29  ;;  %v959_v35 = vld [vmem:[#allocation2 + $0x1e8] sm:$0xff]  ;;  %v1515_v36 = vpack.c.bf16 %v997_v26, %v997_v26  ;;  %v998_v38 = vadd.f32 %v1987_v2, %v927_v34 }
 0x128   :  { %v1547_v37 = vpack.c.bf16 %v1029_v27, %v1029_v27  ;;  %v1030_v39 = vadd.f32 %v1987_v2, %v959_v35  ;;  %1320 = vst.msk [vmem:[%s2368_s3 + $0x78] sm:$0xf] %vm1289_vm4, %v1517_v30  ;;  %v1518_v40 = vpack.c.bf16 %v1000_v32, %v1000_v32 }
 0x129   :  { %1352 = vst.msk [vmem:[%s2368_s3 + $0xf8] sm:$0xf] %vm1289_vm4, %v1549_v31  ;;  %v1550_v41 = vpack.c.bf16 %v1032_v33, %v1032_v33  ;;  %1318 = vst.msk [vmem:[%s2368_s3 + $0x70] sm:$0xf] %vm1289_vm4, %v1515_v36  ;;  %v1516_v2 = vpack.c.bf16 %v998_v38, %v998_v38 }
 0x12a   :  { %1350 = vst.msk [vmem:[%s2368_s3 + $0xf0] sm:$0xf] %vm1289_vm4, %v1547_v37  ;;  %v1548_v42 = vpack.c.bf16 %v1030_v39, %v1030_v39  ;;  %1321 = vst.msk [vmem:[%s2368_s3 + $0x7c] sm:$0xf] %vm1289_vm4, %v1518_v40 }
 0x12b   :  { %1353 = vst.msk [vmem:[%s2368_s3 + $0xfc] sm:$0xf] %vm1289_vm4, %v1550_v41  ;;  %1319 = vst.msk [vmem:[%s2368_s3 + $0x74] sm:$0xf] %vm1289_vm4, %v1516_v2 }
 0x12c   :  { %1351 = vst.msk [vmem:[%s2368_s3 + $0xf4] sm:$0xf] %vm1289_vm4, %v1548_v42 }

</bundles_post_ra>
